<compile_context>
chip_gen: v5e
topology: v5e:2x2
jax: 0.10.0
libtpu: 0.0.40
codegen_flags: <defaults>
</compile_context>

<pallas_src>
import functools

import jax
import jax.numpy as jnp
from jax.experimental import pallas as pl
from jax.experimental.pallas import tpu as pltpu

NUM_AA = 21          # ProteinMPNN alphabet size (one_hot(seqs, 21))
FEAT_DIM = 16        # 12 noisy backbone coords + order + residue_idx + chain feats
HIDDEN = 32          # synthetic pmpnn hidden width
NOISE_LEVEL = 0.1    # StaBddG default noise_level
USE_ANTITHETIC = True

LANES = 128          # TPU lane width
AA_PAD = 32          # logits / one-hot padded 21 -> 32 lanes
PACK_W = 32          # packed per-residue row: [feat(0:16) | id(16) | 0]
ID_LANE = FEAT_DIM   # lane carrying the residue id (or -1 if masked/padded)
HID_PAD = LANES      # hidden width padded 32 -> 128 (zero columns)
T_SEQ = 8            # sequences per grid block (keeps grid(0) >= 2 on v7x)
MAX_CHUNK_L = 512    # residues per grid chunk cap: T_SEQ*CHUNK_L <= 4096 rows
NEG_INF = -1e9       # "-inf" bias for padded logit lanes (exp underflows to 0)


def _round_up(x, m):
    return (x + m - 1) // m * m


def _choose_tiling(L_max):
    """Residue padding / chunk size: whole length in one shot when it fits."""
    L_pad = _round_up(max(L_max, 16), 16)
    if L_pad <= MAX_CHUNK_L:
        return L_pad, L_pad
    L_pad = _round_up(L_max, MAX_CHUNK_L)
    return L_pad, MAX_CHUNK_L


# ----------------------------------------------------------------------------
# Pallas kernel: fused synthetic-pmpnn forward + per-sequence dG accumulation
# ----------------------------------------------------------------------------
def _folding_dg_kernel(rows_ref, wf_ref, we_ref, wo_ref, b_ref, out_ref,
                       *, t_seq, chunk_l):
    """One grid step = t_seq sequences x chunk_l residues -> partial dG.

    rows_ref : (t_seq, chunk_l, PACK_W) bf16  [mask*feat | id(-1 if masked)]
    wf_ref   : (PACK_W, HID_PAD)        bf16  feature -> hidden (rows 16: zero)
    we_ref   : (AA_PAD, HID_PAD)        bf16  one-hot -> hidden (embedding)
    wo_ref   : (HID_PAD, AA_PAD)        bf16  hidden -> 21 logits (cols 21: zero)
    b_ref    : (8, LANES)               f32   row 0 = b1, row 1 = b2 (-1e9 pads)
    out_ref  : (t_seq, LANES)           f32   per-sequence dG (broadcast lanes)
    """
    j = pl.program_id(1)

    @pl.when(j == 0)
    def _init():
        out_ref[...] = jnp.zeros_like(out_ref)

    R = t_seq * chunk_l
    # Collapse (seq, residue) -> MXU-friendly (R, PACK_W) slab (free: chunk_l
    # is a multiple of 16, PACK_W is the lane dim).
    rows = rows_ref[...].reshape(R, PACK_W)                         # bf16

    # Masked one-hot built in-kernel (VPU): id == lane iota; id = -1 for
    # masked / length-padded residues -> all-zero row -> exactly 0 dG.
    ids = rows[:, ID_LANE:ID_LANE + 1].astype(jnp.int32)            # (R, 1)
    lane = jax.lax.broadcasted_iota(jnp.int32, (R, AA_PAD), 1)
    soh_b = lane == ids                                             # (R, 32) bool
    soh = soh_b.astype(jnp.float32)

    b1 = b_ref[0:1, :]                                              # (1, 128) f32
    b2 = b_ref[1:2, 0:AA_PAD]                                       # (1, 32)  f32

    # Synthetic pmpnn: h = feat @ W1 + one_hot @ Emb + b1  (bf16 MXU, f32 acc).
    h = (jnp.dot(rows, wf_ref[...], preferred_element_type=jnp.float32)
         + jnp.dot(soh_b.astype(jnp.bfloat16), we_ref[...],
                   preferred_element_type=jnp.float32)
         + b1)
    h = jnp.maximum(h, 0.0)
    logits = jnp.dot(h.astype(jnp.bfloat16), wo_ref[...],
                     preferred_element_type=jnp.float32) + b2       # (R, 32) f32

    # f32 log-softmax over the 32-lane block only; -1e9 pad lanes -> exp == 0.
    # TODO(synk): further EUP saving would require packing 4 residues' 21-class
    # logit blocks into one 128-lane vreg (layout repack); skipped for now.
    m = jnp.max(logits, axis=-1, keepdims=True)
    lse = m + jnp.log(jnp.sum(jnp.exp(logits - m), axis=-1, keepdims=True))

    # dG contribution without materializing log_probs:
    #   sum(soh * log_probs) = sum(soh * (logits - lse)); soh == 0 on pads.
    contrib = soh * (logits - lse)                                  # (R, 32) f32

    # Per-sequence pooling: chunk_l consecutive residue rows per sequence,
    # reduced with XLU sublane/lane reduces (no iota pool matrix, no MXU dot).
    dgs = []
    for t in range(t_seq):                                          # static unroll
        blk = contrib[t * chunk_l:(t + 1) * chunk_l, :]             # (chunk_l, 32)
        col = jnp.sum(blk, axis=0, keepdims=True)                   # (1, 32)
        dgs.append(jnp.sum(col, axis=1, keepdims=True))             # (1, 1)
    dg = jnp.concatenate(dgs, axis=0)                               # (t_seq, 1)

    out_ref[...] += dg          # broadcast across lanes -> lane-dense output


def _run_folding_dg(rows, params, t_seq, chunk_l):
    """rows: (S_pad, L_pad, PACK_W) bf16 -> per-sequence dG (S_pad,) f32."""
    S_pad, L_pad, _ = rows.shape
    grid = (S_pad // t_seq, L_pad // chunk_l)
    kernel = functools.partial(_folding_dg_kernel, t_seq=t_seq, chunk_l=chunk_l)
    out = pl.pallas_call(
        kernel,
        out_shape=jax.ShapeDtypeStruct((S_pad, LANES), jnp.float32),
        grid_spec=pltpu.PrefetchScalarGridSpec(
            num_scalar_prefetch=0,
            grid=grid,
            in_specs=[
                pl.BlockSpec((t_seq, chunk_l, PACK_W), lambda i, j: (i, j, 0)),
                pl.BlockSpec((PACK_W, HID_PAD), lambda i, j: (0, 0)),
                pl.BlockSpec((AA_PAD, HID_PAD), lambda i, j: (0, 0)),
                pl.BlockSpec((HID_PAD, AA_PAD), lambda i, j: (0, 0)),
                pl.BlockSpec((8, LANES), lambda i, j: (0, 0)),
            ],
            out_specs=pl.BlockSpec((t_seq, LANES), lambda i, j: (i, 0)),
        ),
        compiler_params=pltpu.CompilerParams(
            dimension_semantics=("parallel", "arbitrary"),
            vmem_limit_bytes=32 * 1024 * 1024),
    )(rows, params["Wf"], params["We"], params["Wo"], params["Bslab"])
    return out[:, 0]                                                # (S_pad,)


# ----------------------------------------------------------------------------
# Params / featurize stand-ins and packing glue
# ----------------------------------------------------------------------------
def init_params(key):
    """Synthetic pmpnn params, pre-packed & zero-padded to lane-dense slabs."""
    k1, k2, k3 = jax.random.split(key, 3)
    w1 = 0.1 * jax.random.normal(k1, (FEAT_DIM, HIDDEN), jnp.float32)
    emb = 0.1 * jax.random.normal(k2, (NUM_AA, HIDDEN), jnp.float32)
    w2 = 0.1 * jax.random.normal(k3, (HIDDEN, NUM_AA), jnp.float32)
    b1 = jnp.zeros((HIDDEN,), jnp.float32)
    b2 = jnp.zeros((NUM_AA,), jnp.float32)

    wf = jnp.zeros((PACK_W, HID_PAD), jnp.float32)      # feature -> hidden
    wf = wf.at[0:FEAT_DIM, 0:HIDDEN].set(w1)            # id lane row stays 0
    we = jnp.zeros((AA_PAD, HID_PAD), jnp.float32)      # one-hot -> hidden
    we = we.at[0:NUM_AA, 0:HIDDEN].set(emb)
    wo = jnp.zeros((HID_PAD, AA_PAD), jnp.float32)      # hidden -> logits
    wo = wo.at[0:HIDDEN, 0:NUM_AA].set(w2)

    bslab = jnp.zeros((8, LANES), jnp.float32)
    bslab = bslab.at[0, 0:HIDDEN].set(b1)                           # b1 row
    bslab = bslab.at[1, NUM_AA:AA_PAD].set(NEG_INF)                 # logit pads
    bslab = bslab.at[1, 0:NUM_AA].set(b2)                           # b2 row
    return dict(Wf=wf.astype(jnp.bfloat16), We=we.astype(jnp.bfloat16),
                Wo=wo.astype(jnp.bfloat16), Bslab=bslab)


def featurize(key, length):
    """Synthetic stand-in for the external `featurize` used by StaBddG."""
    # TODO(synk): real featurize parses PDB/domain objects; synthetic stand-in.
    kx, ks = jax.random.split(key)
    X = jax.random.normal(kx, (1, length, 4, 3), jnp.float32)      # N,CA,C,O
    wt_seq = jax.random.randint(ks, (1, length), 0, NUM_AA, jnp.int32)
    mask = jnp.ones((1, length), jnp.float32)
    chain_M = jnp.ones((1, length), jnp.float32)
    residue_idx = jnp.arange(length, dtype=jnp.float32)[None, :]
    chain_enc = jnp.ones((1, length), jnp.float32)
    return X, wt_seq, mask, chain_M, residue_idx, chain_enc


def _pack_domain_rows(domain, mut_seqs, key, L_pad):
    """Packed per-residue rows for the [wt ; mut] sequences of one domain.

    Returns (B+1, L_pad, PACK_W) bf16: lanes [0:16] = mask*features,
    lane 16 = residue id (or -1 for masked / length-padded residues), rest 0.
    Built directly in bf16 — no f32 one-hot slab is ever materialized.
    """
    X, wt_seq, mask, chain_M, residue_idx, chain_enc = domain
    L = X.shape[1]

    k_ord, k_noise = jax.random.split(key)
    if USE_ANTITHETIC:
        # TODO(synk): like the reference module, one shared decoding-order /
        # backbone-noise draw for wt and mut (no explicit +/- antithetic pair).
        decoding_order = jnp.argsort(
            jnp.abs(jax.random.normal(k_ord, chain_M.shape)), axis=-1)
        backbone_noise = NOISE_LEVEL * jax.random.normal(k_noise, X.shape)
    else:
        decoding_order = jnp.zeros(chain_M.shape, jnp.int32)
        backbone_noise = jnp.zeros(X.shape, jnp.float32)

    seqs = jnp.concatenate([wt_seq, mut_seqs], axis=0)             # (B+1, L)
    nb = seqs.shape[0]

    coords = (X + backbone_noise).reshape(1, L, 12)
    feat = jnp.concatenate(
        [coords,
         (decoding_order.astype(jnp.float32) / L)[..., None],
         (residue_idx / L)[..., None],
         chain_enc[..., None],
         chain_M[..., None]], axis=-1)                             # (1, L, 16)
    feat = (feat * mask[..., None]).astype(jnp.bfloat16)           # masked, bf16
    feat = jnp.broadcast_to(feat, (nb, L, FEAT_DIM))

    ids = jnp.where(mask > 0.5, seqs.astype(jnp.float32), -1.0)    # -1 == masked
    ids = ids.astype(jnp.bfloat16)[..., None]                      # (B+1, L, 1)

    packed = jnp.concatenate(
        [feat, ids,
         jnp.zeros((nb, L, PACK_W - FEAT_DIM - 1), jnp.bfloat16)],
        axis=-1)                                                   # (B+1, L, 32)

    # Length padding: feats 0, id lane -1 so padded residues match no class.
    pad = jnp.zeros((nb, L_pad - L, PACK_W), jnp.bfloat16)
    pad = pad.at[:, :, ID_LANE].set(-1.0)
    return jnp.concatenate([packed, pad], axis=1)                  # (B+1, L_pad, 32)


# ----------------------------------------------------------------------------
# StaBddG forward: one fused kernel launch for all six folding-dG evaluations
# ----------------------------------------------------------------------------
def stabddg_forward(params, complex_d, binder1_d, binder2_d,
                    complex_mut, binder1_mut, binder2_mut, key):
    kc, k1, k2 = jax.random.split(key, 3)
    work = [(complex_d, complex_mut, kc),
            (binder1_d, binder1_mut, k1),
            (binder2_d, binder2_mut, k2)]

    B = complex_mut.shape[0]
    L_max = max(d[0].shape[1] for d, _, _ in work)                 # static
    L_pad, chunk_l = _choose_tiling(L_max)

    rows = jnp.concatenate(
        [_pack_domain_rows(d, mut, k, L_pad) for d, mut, k in work], axis=0)
    S_total = rows.shape[0]                                        # 3 * (B + 1)
    S_pad = _round_up(S_total, T_SEQ)
    # Sequence-axis padding rows compute garbage dG (finite) and are discarded.
    rows = jnp.pad(rows, ((0, S_pad - S_total), (0, 0), (0, 0)))

    dg = _run_folding_dg(rows, params, T_SEQ, chunk_l)[:S_total].reshape(3, B + 1)
    ddg = dg[:, 1:] - dg[:, 0:1]                 # mut_dG - wt_dG per domain
    return ddg[0] - (ddg[1] + ddg[2])            # binding ddG, shape (B,)


# ----------------------------------------------------------------------------
if __name__ == "__main__":
    root = jax.random.PRNGKey(0)
    kp, kc, kb1, kb2, km1, km2, km3, kfwd = jax.random.split(root, 8)

    params = init_params(kp)

    L_B1, L_B2 = 16, 16
    L_C = L_B1 + L_B2          # complex = concatenation of the two binders
    B = 2                      # mutant sequences per domain

    complex_d = featurize(kc, L_C)
    binder1_d = featurize(kb1, L_B1)
    binder2_d = featurize(kb2, L_B2)

    complex_mut = jax.random.randint(km1, (B, L_C), 0, NUM_AA, jnp.int32)
    binder1_mut = jax.random.randint(km2, (B, L_B1), 0, NUM_AA, jnp.int32)
    binder2_mut = jax.random.randint(km3, (B, L_B2), 0, NUM_AA, jnp.int32)

    fwd = jax.jit(functools.partial(stabddg_forward, params))
    ddG = fwd(complex_d, binder1_d, binder2_d,
              complex_mut, binder1_mut, binder2_mut, kfwd)
    ddG = jax.block_until_ready(ddG)
    assert ddG.shape == (B,) and bool(jnp.all(jnp.isfinite(ddG)))
    print("KERNEL_OK")
</pallas_src>

<mosaic_0001>
module attributes {stable_mosaic.version = 11 : i64} {
  func.func @_folding_dg_kernel(%arg0: i32, %arg1: i32, %arg2: memref<8x32x32xbf16, #tpu.memory_space<vmem>>, %arg3: memref<32x128xbf16, #tpu.memory_space<vmem>>, %arg4: memref<32x128xbf16, #tpu.memory_space<vmem>>, %arg5: memref<128x32xbf16, #tpu.memory_space<vmem>>, %arg6: memref<8x128xf32, #tpu.memory_space<vmem>>, %arg7: memref<8x128xf32, #tpu.memory_space<vmem>>) attributes {dimension_semantics = [#tpu.dimension_semantics<parallel>, #tpu.dimension_semantics<arbitrary>], iteration_bounds = array<i64: 2, 1>, scalar_prefetch = 0 : i64, scratch_operands = 0 : i64, tpu.core_type = #tpu.core_type<tc>, window_params = [{transform_indices = @transform_0, window_bounds = array<i64: 8, 32, 32>}, {pipeline_mode = #tpu.pipeline_mode<synchronous>, transform_indices = @transform_1, window_bounds = array<i64: 32, 128>}, {pipeline_mode = #tpu.pipeline_mode<synchronous>, transform_indices = @transform_2, window_bounds = array<i64: 32, 128>}, {pipeline_mode = #tpu.pipeline_mode<synchronous>, transform_indices = @transform_3, window_bounds = array<i64: 128, 32>}, {pipeline_mode = #tpu.pipeline_mode<synchronous>, transform_indices = @transform_4, window_bounds = array<i64: 8, 128>}, {transform_indices = @transform_5, window_bounds = array<i64: 8, 128>}]} {
    %c0_i32 = arith.constant 0 : i32
    %0 = arith.cmpi eq, %arg1, %c0_i32 : i32
    %1 = arith.extui %0 : i1 to i32
    %c0_i32_0 = arith.constant 0 : i32
    %2 = arith.cmpi ne, %1, %c0_i32_0 : i32
    scf.if %2 {
      %cst_37 = arith.constant 0.000000e+00 : f32
      %88 = vector.broadcast %cst_37 : f32 to vector<8x128xf32>
      %c0_38 = arith.constant 0 : index
      %c0_39 = arith.constant 0 : index
      %89 = vector.load %arg7[%c0_38, %c0_39] : memref<8x128xf32, #tpu.memory_space<vmem>>, vector<8x128xf32>
      tpu.vector_store %arg7[%c0_38, %c0_39], %88 {strides = array<i32>} : memref<8x128xf32, #tpu.memory_space<vmem>>, vector<8x128xf32>,
    } else {
    }
    %c0 = arith.constant 0 : index
    %c0_1 = arith.constant 0 : index
    %c0_2 = arith.constant 0 : index
    %3 = vector.load %arg2[%c0, %c0_1, %c0_2] : memref<8x32x32xbf16, #tpu.memory_space<vmem>>, vector<8x32x32xbf16>
    %4 = vector.shape_cast %3 : vector<8x32x32xbf16> to vector<256x32xbf16>
    %5 = vector.extract_strided_slice %4 {offsets = [0, 16], sizes = [256, 1], strides = [1, 1]} : vector<256x32xbf16> to vector<256x1xbf16>
    %6 = arith.fptosi %5 : vector<256x1xbf16> to vector<256x1xi32>
    %7 = tpu.iota {dimensions = array<i32: 1>} : vector<256x32xi32>
    %8 = vector.broadcast %6 : vector<256x1xi32> to vector<256x32xi32>
    %9 = arith.cmpi eq, %7, %8 : vector<256x32xi32>
    %10 = arith.extui %9 : vector<256x32xi1> to vector<256x32xi32>
    %11 = arith.sitofp %10 : vector<256x32xi32> to vector<256x32xf32>
    %c0_3 = arith.constant 0 : index
    %c0_4 = arith.constant 0 : index
    %12 = vector.load %arg6[%c0_3, %c0_4] : memref<8x128xf32, #tpu.memory_space<vmem>>, vector<1x128xf32>
    %c1 = arith.constant 1 : index
    %c0_5 = arith.constant 0 : index
    %13 = vector.load %arg6[%c1, %c0_5] : memref<8x128xf32, #tpu.memory_space<vmem>>, vector<1x32xf32>
    %c0_6 = arith.constant 0 : index
    %c0_7 = arith.constant 0 : index
    %14 = vector.load %arg3[%c0_6, %c0_7] : memref<32x128xbf16, #tpu.memory_space<vmem>>, vector<32x128xbf16>
    %cst = arith.constant dense<0.000000e+00> : vector<256x128xf32>
    %15 = tpu.matmul %4, %14, %cst {dimension_numbers = #tpu.dot_dimension_numbers<[1], [0], [0], [1], [0, 0, 1, 1], [], []>} : vector<256x32xbf16>, vector<32x128xbf16>, vector<256x128xf32> -> vector<256x128xf32>
    %16 = arith.extui %9 : vector<256x32xi1> to vector<256x32xi32>
    %17 = arith.sitofp %16 : vector<256x32xi32> to vector<256x32xf32>
    %18 = arith.truncf %17 : vector<256x32xf32> to vector<256x32xbf16>
    %c0_8 = arith.constant 0 : index
    %c0_9 = arith.constant 0 : index
    %19 = vector.load %arg4[%c0_8, %c0_9] : memref<32x128xbf16, #tpu.memory_space<vmem>>, vector<32x128xbf16>
    %cst_10 = arith.constant dense<0.000000e+00> : vector<256x128xf32>
    %20 = tpu.matmul %18, %19, %cst_10 {dimension_numbers = #tpu.dot_dimension_numbers<[1], [0], [0], [1], [0, 0, 1, 1], [], []>} : vector<256x32xbf16>, vector<32x128xbf16>, vector<256x128xf32> -> vector<256x128xf32>
    %21 = arith.addf %15, %20 : vector<256x128xf32>
    %22 = vector.broadcast %12 : vector<1x128xf32> to vector<256x128xf32>
    %23 = arith.addf %21, %22 : vector<256x128xf32>
    %cst_11 = arith.constant 0.000000e+00 : f32
    %24 = vector.broadcast %cst_11 : f32 to vector<256x128xf32>
    %25 = arith.maximumf %23, %24 : vector<256x128xf32>
    %26 = arith.truncf %25 : vector<256x128xf32> to vector<256x128xbf16>
    %c0_12 = arith.constant 0 : index
    %c0_13 = arith.constant 0 : index
    %27 = vector.load %arg5[%c0_12, %c0_13] : memref<128x32xbf16, #tpu.memory_space<vmem>>, vector<128x32xbf16>
    %cst_14 = arith.constant dense<0.000000e+00> : vector<256x32xf32>
    %28 = tpu.matmul %26, %27, %cst_14 {dimension_numbers = #tpu.dot_dimension_numbers<[1], [0], [0], [1], [0, 0, 1, 1], [], []>} : vector<256x128xbf16>, vector<128x32xbf16>, vector<256x32xf32> -> vector<256x32xf32>
    %29 = vector.broadcast %13 : vector<1x32xf32> to vector<256x32xf32>
    %30 = arith.addf %28, %29 : vector<256x32xf32>
    %cst_15 = arith.constant dense<0xFF800000> : vector<256xf32>
    %31 = vector.multi_reduction <maximumf>, %30, %cst_15 [1] : vector<256x32xf32> to vector<256xf32>
    %32 = vector.shape_cast %31 : vector<256xf32> to vector<256x1xf32>
    %33 = vector.broadcast %32 : vector<256x1xf32> to vector<256x32xf32>
    %34 = arith.subf %30, %33 : vector<256x32xf32>
    %35 = math.exp %34 : vector<256x32xf32>
    %cst_16 = arith.constant dense<0.000000e+00> : vector<256xf32>
    %36 = vector.multi_reduction <add>, %35, %cst_16 [1] : vector<256x32xf32> to vector<256xf32>
    %37 = vector.shape_cast %36 : vector<256xf32> to vector<256x1xf32>
    %38 = math.log %37 : vector<256x1xf32>
    %39 = arith.addf %32, %38 : vector<256x1xf32>
    %40 = vector.broadcast %39 : vector<256x1xf32> to vector<256x32xf32>
    %41 = arith.subf %30, %40 : vector<256x32xf32>
    %42 = arith.mulf %11, %41 : vector<256x32xf32>
    %43 = vector.extract_strided_slice %42 {offsets = [0, 0], sizes = [32, 32], strides = [1, 1]} : vector<256x32xf32> to vector<32x32xf32>
    %cst_17 = arith.constant dense<0.000000e+00> : vector<32xf32>
    %44 = vector.multi_reduction <add>, %43, %cst_17 [0] : vector<32x32xf32> to vector<32xf32>
    %45 = vector.shape_cast %44 : vector<32xf32> to vector<1x32xf32>
    %cst_18 = arith.constant dense<0.000000e+00> : vector<1xf32>
    %46 = vector.multi_reduction <add>, %45, %cst_18 [1] : vector<1x32xf32> to vector<1xf32>
    %47 = vector.shape_cast %46 : vector<1xf32> to vector<1x1xf32>
    %48 = vector.extract_strided_slice %42 {offsets = [32, 0], sizes = [32, 32], strides = [1, 1]} : vector<256x32xf32> to vector<32x32xf32>
    %cst_19 = arith.constant dense<0.000000e+00> : vector<32xf32>
    %49 = vector.multi_reduction <add>, %48, %cst_19 [0] : vector<32x32xf32> to vector<32xf32>
    %50 = vector.shape_cast %49 : vector<32xf32> to vector<1x32xf32>
    %cst_20 = arith.constant dense<0.000000e+00> : vector<1xf32>
    %51 = vector.multi_reduction <add>, %50, %cst_20 [1] : vector<1x32xf32> to vector<1xf32>
    %52 = vector.shape_cast %51 : vector<1xf32> to vector<1x1xf32>
    %53 = vector.extract_strided_slice %42 {offsets = [64, 0], sizes = [32, 32], strides = [1, 1]} : vector<256x32xf32> to vector<32x32xf32>
    %cst_21 = arith.constant dense<0.000000e+00> : vector<32xf32>
    %54 = vector.multi_reduction <add>, %53, %cst_21 [0] : vector<32x32xf32> to vector<32xf32>
    %55 = vector.shape_cast %54 : vector<32xf32> to vector<1x32xf32>
    %cst_22 = arith.constant dense<0.000000e+00> : vector<1xf32>
    %56 = vector.multi_reduction <add>, %55, %cst_22 [1] : vector<1x32xf32> to vector<1xf32>
    %57 = vector.shape_cast %56 : vector<1xf32> to vector<1x1xf32>
    %58 = vector.extract_strided_slice %42 {offsets = [96, 0], sizes = [32, 32], strides = [1, 1]} : vector<256x32xf32> to vector<32x32xf32>
    %cst_23 = arith.constant dense<0.000000e+00> : vector<32xf32>
    %59 = vector.multi_reduction <add>, %58, %cst_23 [0] : vector<32x32xf32> to vector<32xf32>
    %60 = vector.shape_cast %59 : vector<32xf32> to vector<1x32xf32>
    %cst_24 = arith.constant dense<0.000000e+00> : vector<1xf32>
    %61 = vector.multi_reduction <add>, %60, %cst_24 [1] : vector<1x32xf32> to vector<1xf32>
    %62 = vector.shape_cast %61 : vector<1xf32> to vector<1x1xf32>
    %63 = vector.extract_strided_slice %42 {offsets = [128, 0], sizes = [32, 32], strides = [1, 1]} : vector<256x32xf32> to vector<32x32xf32>
    %cst_25 = arith.constant dense<0.000000e+00> : vector<32xf32>
    %64 = vector.multi_reduction <add>, %63, %cst_25 [0] : vector<32x32xf32> to vector<32xf32>
    %65 = vector.shape_cast %64 : vector<32xf32> to vector<1x32xf32>
    %cst_26 = arith.constant dense<0.000000e+00> : vector<1xf32>
    %66 = vector.multi_reduction <add>, %65, %cst_26 [1] : vector<1x32xf32> to vector<1xf32>
    %67 = vector.shape_cast %66 : vector<1xf32> to vector<1x1xf32>
    %68 = vector.extract_strided_slice %42 {offsets = [160, 0], sizes = [32, 32], strides = [1, 1]} : vector<256x32xf32> to vector<32x32xf32>
    %cst_27 = arith.constant dense<0.000000e+00> : vector<32xf32>
    %69 = vector.multi_reduction <add>, %68, %cst_27 [0] : vector<32x32xf32> to vector<32xf32>
    %70 = vector.shape_cast %69 : vector<32xf32> to vector<1x32xf32>
    %cst_28 = arith.constant dense<0.000000e+00> : vector<1xf32>
    %71 = vector.multi_reduction <add>, %70, %cst_28 [1] : vector<1x32xf32> to vector<1xf32>
    %72 = vector.shape_cast %71 : vector<1xf32> to vector<1x1xf32>
    %73 = vector.extract_strided_slice %42 {offsets = [192, 0], sizes = [32, 32], strides = [1, 1]} : vector<256x32xf32> to vector<32x32xf32>
    %cst_29 = arith.constant dense<0.000000e+00> : vector<32xf32>
    %74 = vector.multi_reduction <add>, %73, %cst_29 [0] : vector<32x32xf32> to vector<32xf32>
    %75 = vector.shape_cast %74 : vector<32xf32> to vector<1x32xf32>
    %cst_30 = arith.constant dense<0.000000e+00> : vector<1xf32>
    %76 = vector.multi_reduction <add>, %75, %cst_30 [1] : vector<1x32xf32> to vector<1xf32>
    %77 = vector.shape_cast %76 : vector<1xf32> to vector<1x1xf32>
    %78 = vector.extract_strided_slice %42 {offsets = [224, 0], sizes = [32, 32], strides = [1, 1]} : vector<256x32xf32> to vector<32x32xf32>
    %cst_31 = arith.constant dense<0.000000e+00> : vector<32xf32>
    %79 = vector.multi_reduction <add>, %78, %cst_31 [0] : vector<32x32xf32> to vector<32xf32>
    %80 = vector.shape_cast %79 : vector<32xf32> to vector<1x32xf32>
    %cst_32 = arith.constant dense<0.000000e+00> : vector<1xf32>
    %81 = vector.multi_reduction <add>, %80, %cst_32 [1] : vector<1x32xf32> to vector<1xf32>
    %82 = vector.shape_cast %81 : vector<1xf32> to vector<1x1xf32>
    %83 = tpu.concatenate %47, %52, %57, %62, %67, %72, %77, %82 in 0 : vector<1x1xf32>, vector<1x1xf32>, vector<1x1xf32>, vector<1x1xf32>, vector<1x1xf32>, vector<1x1xf32>, vector<1x1xf32>, vector<1x1xf32> -> vector<8x1xf32>
    %c0_33 = arith.constant 0 : index
    %c0_34 = arith.constant 0 : index
    %84 = vector.load %arg7[%c0_33, %c0_34] : memref<8x128xf32, #tpu.memory_space<vmem>>, vector<8x128xf32>
    %85 = vector.broadcast %83 : vector<8x1xf32> to vector<8x128xf32>
    %86 = arith.addf %84, %85 : vector<8x128xf32>
    %c0_35 = arith.constant 0 : index
    %c0_36 = arith.constant 0 : index
    %87 = vector.load %arg7[%c0_35, %c0_36] : memref<8x128xf32, #tpu.memory_space<vmem>>, vector<8x128xf32>
    tpu.vector_store %arg7[%c0_35, %c0_36], %86 {strides = array<i32>} : memref<8x128xf32, #tpu.memory_space<vmem>>, vector<8x128xf32>,
    return
  }
  func.func @transform_0(%arg0: i32, %arg1: i32) -> (i32, i32, i32) {
    %c0_i32 = arith.constant 0 : i32
    %c0_i32_0 = arith.constant 0 : i32
    return %arg0, %arg1, %c0_i32 : i32, i32, i32
  }
  func.func @transform_1(%arg0: i32, %arg1: i32) -> (i32, i32) {
    %c0_i32 = arith.constant 0 : i32
    %c0_i32_0 = arith.constant 0 : i32
    %c0_i32_1 = arith.constant 0 : i32
    return %c0_i32, %c0_i32_0 : i32, i32
  }
  func.func @transform_2(%arg0: i32, %arg1: i32) -> (i32, i32) {
    %c0_i32 = arith.constant 0 : i32
    %c0_i32_0 = arith.constant 0 : i32
    %c0_i32_1 = arith.constant 0 : i32
    return %c0_i32, %c0_i32_0 : i32, i32
  }
  func.func @transform_3(%arg0: i32, %arg1: i32) -> (i32, i32) {
    %c0_i32 = arith.constant 0 : i32
    %c0_i32_0 = arith.constant 0 : i32
    %c0_i32_1 = arith.constant 0 : i32
    return %c0_i32, %c0_i32_0 : i32, i32
  }
  func.func @transform_4(%arg0: i32, %arg1: i32) -> (i32, i32) {
    %c0_i32 = arith.constant 0 : i32
    %c0_i32_0 = arith.constant 0 : i32
    %c0_i32_1 = arith.constant 0 : i32
    return %c0_i32, %c0_i32_0 : i32, i32
  }
  func.func @transform_5(%arg0: i32, %arg1: i32) -> (i32, i32) {
    %c0_i32 = arith.constant 0 : i32
    %c0_i32_0 = arith.constant 0 : i32
    return %arg0, %c0_i32 : i32, i32
  }
}

</mosaic_0001>

<bundles_post_ra>
// kernel: stabddg_forward.3
= control target key start
LH: loop header
LB: loop body
LE: loop exit
PB: predicated region body
PF: predicated region fallthrough
CT: control target
= control target key end

     0   :  { %s2464_s18 = smov 0   ;;  %s2466_s19 = smov 0   ;;  %s3332_s0 = inlined_call_operand.vmem [shape: bf16[16,32,32], index: 0, kind: input, shape index: {}]   ;;  %s3333_s1 = inlined_call_operand.vmem [shape: bf16[32,128], index: 1, kind: input, shape index: {}]   ;;  %s3334_s2 = inlined_call_operand.vmem [shape: bf16[32,128], index: 2, kind: input, shape index: {}]   ;;  %s3335_s3 = inlined_call_operand.vmem [shape: bf16[128,32], index: 3, kind: input, shape index: {}]   ;;  %s3336_s4 = inlined_call_operand.vmem [shape: f32[8,128], index: 4, kind: input, shape index: {}]   ;;  %s3337_s5 = inlined_call_operand.vmem [shape: f32[16,128], index: 5, kind: output, shape index: {}]  }
   0x1   :  { %s2468_s20 = smov 0  }
   0x2 LB: > { %s27_s21 = sadd.s32 1, %s2425_s19  ;;  %p1861_p0 = scmp.ge.s32.totalorder %s2429_s20, 1  ;;  %s2429_s20 = sphi %s2468_s20, %s15_s20   ;;  %s2425_s19 = sphi %s2466_s19, %s3444_s19   ;;  %s2421_s18 = sphi %s2464_s18, %s3443_s18  }
   0x3   : > { %p29_p1 = scmp.ge.s32.totalorder %s27_s21, 2  ;;  %p208_p2 = scmp.lt.s32.totalorder %s2429_s20, 3 }
   0x5   : > { %s3446_s21 = smov (%p29_p1, %s27_s21), 0  ;;  %p209_p3 = pnand %p1861_p0, %p208_p2 }
   0x7   : > { %212 = sbr.rel (%p209_p3) target bundleno = 1188 (0x4a4), region = 40 }
   0xc   : > { %s1862_s22 = sshll.u32 %s2421_s18, 3  ;;  %v2431_v0 = vmov 16   ;;  %p252_p5 = scmp.lt.s32.totalorder %s2421_s18, 1 }
   0xd   : > { %2274 = vset.pattern.permute.xlu2 %v2431_v0  ;;  %2273 = vset.pattern.permute.xlu1 %v2431_v0  ;;  %p242_p4 = scmp.lt.s32.totalorder %s1862_s22, 15 }
   0xe   : > { %2272 = vset.pattern.permute.xlu0 %v2431_v0  ;;  %s3450_s18 = smov (!%p252_p5, %s2421_s18), 1 }
   0xf   : > { %s3448_s22 = smov (!%p242_p4, %s1862_s22), 15  ;;  %s1865_s9 = sshll.u32 %s3450_s18, 3 }
  0x10   : > { %s2044_s23 = sshll.u32 %s3448_s22, 4  ;;  %s255_s12 = scalar_lea.vmem %s3337_s5, %s1865_s9 }
  0x11   : > { %s2488_s26 = scalar_lea.vmem %s3332_s0, %s2044_s23 }
  0x12   : > { %v266_v1 = vld [vmem:[%s2488_s26 + $0x10] sm:$0xff]   ;;  %v264_v2 = vld [vmem:[%s2488_s26 + $0x8] sm:$0xff]   ;;  %v262_v3 = vld [vmem:[%s2488_s26] sm:$0xff]  }
  0x13   : > { %v298_v4 = vunpack.c.l.bf16 %v266_v1  ;;  %v296_v5 = vunpack.c.l.bf16 %v264_v2  ;;  %v294_v6 = vunpack.c.l.bf16 %v262_v3  ;;  %v299_v7 = vunpack.c.h.bf16 %v266_v1  ;;  %v270_v21 = vld [vmem:[%s2488_s26 + $0x20] sm:$0xff]   ;;  %v269_v26 = vld [vmem:[%s2488_s26 + $0x18] sm:$0xff]   ;;  %v273_v43 = vld [vmem:[%s2488_s26 + $0x2c] sm:$0xff]  }
  0x14   : > { %v297_v8 = vunpack.c.h.bf16 %v264_v2  ;;  %v295_v9 = vunpack.c.h.bf16 %v262_v3  ;;  %v302_v31 = vunpack.c.l.bf16 %v270_v21  ;;  %v301_v33 = vunpack.c.h.bf16 %v269_v26  ;;  %v272_v46 = vld [vmem:[%s2488_s26 + $0x28] sm:$0xf]  ;;  %v276_v60 = vld [vmem:[%s2488_s26 + $0x38] sm:$0xff]   ;;  %v275_v63 = vld [vmem:[%s2488_s26 + $0x34] sm:$0xf] }
  0x15   : > { %vm2105_vm0 = vcmp.lt.s32.totalorder %v298_v4, 0  ;;  %v2106_v10 = vceil.f32 %v298_v4  ;;  %v2107_v11 = vfloor.f32 %v298_v4  ;;  %vm2095_vm1 = vcmp.lt.s32.totalorder %v296_v5, 0 }
  0x16   : > { %v2096_v12 = vceil.f32 %v296_v5  ;;  %v2097_v13 = vfloor.f32 %v296_v5  ;;  %vm2085_vm2 = vcmp.lt.s32.totalorder %v294_v6, 0  ;;  %v2086_v14 = vceil.f32 %v294_v6 }
  0x17   : > { %v2108_v15 = vsel %vm2105_vm0, %v2106_v10, %v2107_v11  ;;  %v2087_v16 = vfloor.f32 %v294_v6  ;;  %vm2110_vm3 = vcmp.lt.s32.totalorder %v299_v7, 0  ;;  %v2111_v17 = vceil.f32 %v299_v7 }
  0x18   : > { %v2109_v18 = vcvt.f32.s32 %v2108_v15  ;;  %v2098_v19 = vsel %vm2095_vm1, %v2096_v12, %v2097_v13  ;;  %v2112_v20 = vfloor.f32 %v299_v7  ;;  %vm2100_vm4 = vcmp.lt.s32.totalorder %v297_v8, 0  ;;  %v279_v13 = vld [vmem:[%s2488_s26 + $0x44] sm:$0xff]  }
  0x19   : > { %v2099_v22 = vcvt.f32.s32 %v2098_v19  ;;  %v2088_v23 = vsel %vm2085_vm2, %v2086_v14, %v2087_v16  ;;  %v2101_v24 = vceil.f32 %v297_v8  ;;  %v2102_v25 = vfloor.f32 %v297_v8  ;;  %v278_v16 = vld [vmem:[%s2488_s26 + $0x40] sm:$0xf] }
  0x1a   : > { %373 = vperm.xlu2 %2274, %v2109_v18   ;;  %v2089_v27 = vcvt.f32.s32 %v2088_v23  ;;  %vm2090_vm5 = vcmp.lt.s32.totalorder %v295_v9, 0  ;;  %v2091_v28 = vceil.f32 %v295_v9  ;;  %v2113_v29 = vsel %vm2110_vm3, %v2111_v17, %v2112_v20 }
  0x1b   : > { %367 = vperm.xlu1 %2273, %v2099_v22   ;;  %v2092_v30 = vfloor.f32 %v295_v9  ;;  %v2103_v32 = vsel %vm2100_vm4, %v2101_v24, %v2102_v25  ;;  %v300_v35 = vunpack.c.l.bf16 %v269_v26  ;;  %v2114_v36 = vcvt.f32.s32 %v2113_v29 }
  0x1c   : > { %361 = vperm.xlu0 %2272, %v2089_v27   ;;  %v2104_v37 = vcvt.f32.s32 %v2103_v32  ;;  %v2126_v38 = vceil.f32 %v302_v31  ;;  %v2127_v39 = vfloor.f32 %v302_v31  ;;  %vm2125_vm6 = vcmp.lt.s32.totalorder %v302_v31, 0 }
  0x1d   : > { %v2093_v34 = vsel %vm2090_vm5, %v2091_v28, %v2092_v30  ;;  %v2121_v41 = vceil.f32 %v301_v33  ;;  %v2122_v42 = vfloor.f32 %v301_v33  ;;  %vm2120_vm7 = vcmp.lt.s32.totalorder %v301_v33, 0  ;;  %v288_v30 = vld [vmem:[%s2488_s26 + $0x68] sm:$0xff]  }
  0x1e   : > { %v2094_v40 = vcvt.f32.s32 %v2093_v34  ;;  %v2116_v44 = vceil.f32 %v300_v35  ;;  %v2117_v45 = vfloor.f32 %v300_v35  ;;  %vm2115_vm8 = vcmp.lt.s32.totalorder %v300_v35, 0  ;;  %v281_v33 = vld [vmem:[%s2488_s26 + $0x4c] sm:$0xff]  }
  0x1f   : > { %v2128_v47 = vsel %vm2125_vm6, %v2126_v38, %v2127_v39  ;;  %v305_v48 = vunpack.c.l.bf16 %v273_v43  ;;  %v2123_v49 = vsel %vm2120_vm7, %v2121_v41, %v2122_v42  ;;  %v304_v50 = vunpack.c.l.bf16 %v272_v46 }
  0x20   : > { %v2118_v51 = vsel %vm2115_vm8, %v2116_v44, %v2117_v45  ;;  %v303_v52 = vunpack.c.h.bf16 %v270_v21  ;;  %v2129_v53 = vcvt.f32.s32 %v2128_v47  ;;  %v2124_v54 = vcvt.f32.s32 %v2123_v49  ;;  %v283_v47 = vld [vmem:[%s2488_s26 + $0x54] sm:$0xff]  }
  0x21   : > { %v2141_v55 = vceil.f32 %v305_v48  ;;  %v2142_v56 = vfloor.f32 %v305_v48  ;;  %v2119_v57 = vcvt.f32.s32 %v2118_v51  ;;  %vm2140_vm9 = vcmp.lt.s32.totalorder %v305_v48, 0 }
  0x22   : > { %376 = vperm.xlu2 %2274, %v2114_v36   ;;  %v2136_v58 = vceil.f32 %v304_v50  ;;  %v2137_v59 = vfloor.f32 %v304_v50  ;;  %vm2135_vm10 = vcmp.lt.s32.totalorder %v304_v50, 0  ;;  %v2131_v61 = vceil.f32 %v303_v52 }
  0x23   : > { %370 = vperm.xlu1 %2273, %v2104_v37   ;;  %v2132_v62 = vfloor.f32 %v303_v52  ;;  %vm2130_vm11 = vcmp.lt.s32.totalorder %v303_v52, 0  ;;  %v2143_v0 = vsel %vm2140_vm9, %v2141_v55, %v2142_v56  ;;  %v308_v1 = vunpack.c.l.bf16 %v276_v60 }
  0x24   : > { %364 = vperm.xlu0 %2272, %v2094_v40   ;;  %v2138_v2 = vsel %vm2135_vm10, %v2136_v58, %v2137_v59  ;;  %v307_v3 = vunpack.c.l.bf16 %v275_v63  ;;  %v306_v5 = vunpack.c.h.bf16 %v273_v43  ;;  %v2144_v6 = vcvt.f32.s32 %v2143_v0 }
  0x25   : > { %v2133_v4 = vsel %vm2130_vm11, %v2131_v61, %v2132_v62  ;;  %v2139_v7 = vcvt.f32.s32 %v2138_v2  ;;  %v2156_v8 = vceil.f32 %v308_v1  ;;  %v2157_v9 = vfloor.f32 %v308_v1  ;;  %v290_v2 = vld [vmem:[%s2488_s26 + $0x70] sm:$0xf] }
  0x26   : > { %v2134_v10 = vcvt.f32.s32 %v2133_v4  ;;  %vm2155_vm12 = vcmp.lt.s32.totalorder %v308_v1, 0  ;;  %v2151_v11 = vceil.f32 %v307_v3  ;;  %v2152_v12 = vfloor.f32 %v307_v3  ;;  %v291_v1 = vld [vmem:[%s2488_s26 + $0x74] sm:$0xff]  }
  0x27   : > { %vm2150_vm13 = vcmp.lt.s32.totalorder %v307_v3, 0  ;;  %v2146_v14 = vceil.f32 %v306_v5  ;;  %v2147_v15 = vfloor.f32 %v306_v5  ;;  %vm2145_vm14 = vcmp.lt.s32.totalorder %v306_v5, 0 }
  0x28   : > { %v2158_v17 = vsel %vm2155_vm12, %v2156_v8, %v2157_v9  ;;  %v311_v18 = vunpack.c.l.bf16 %v279_v13  ;;  %v2153_v19 = vsel %vm2150_vm13, %v2151_v11, %v2152_v12  ;;  %v310_v20 = vunpack.c.l.bf16 %v278_v16  ;;  %v293_v16 = vld [vmem:[%s2488_s26 + $0x7c] sm:$0xf] }
  0x29   : > { %v2148_v21 = vsel %vm2145_vm14, %v2146_v14, %v2147_v15  ;;  %v309_v22 = vunpack.c.h.bf16 %v276_v60  ;;  %v2159_v23 = vcvt.f32.s32 %v2158_v17  ;;  %v2154_v24 = vcvt.f32.s32 %v2153_v19  ;;  %v285_v19 = vld [vmem:[%s2488_s26 + $0x5c] sm:$0xff]  }
  0x2a   : > { %385 = vperm.xlu2 %2274, %v2129_v53   ;;  %v2171_v25 = vceil.f32 %v311_v18  ;;  %v2172_v26 = vfloor.f32 %v311_v18  ;;  %v2149_v27 = vcvt.f32.s32 %v2148_v21  ;;  %vm2170_vm15 = vcmp.lt.s32.totalorder %v311_v18, 0 }
  0x2b   : > { %382 = vperm.xlu1 %2273, %v2124_v54   ;;  %v2166_v28 = vceil.f32 %v310_v20  ;;  %v2167_v29 = vfloor.f32 %v310_v20  ;;  %vm2165_vm0 = vcmp.lt.s32.totalorder %v310_v20, 0  ;;  %v2161_v31 = vceil.f32 %v309_v22 }
  0x2c   : > { %379 = vperm.xlu0 %2272, %v2119_v57   ;;  %v2162_v32 = vfloor.f32 %v309_v22  ;;  %vm2160_vm1 = vcmp.lt.s32.totalorder %v309_v22, 0  ;;  %v2173_v34 = vsel %vm2170_vm15, %v2171_v25, %v2172_v26  ;;  %v320_v35 = vunpack.c.l.bf16 %v288_v30 }
  0x2d   : > { %v2168_v36 = vsel %vm2165_vm0, %v2166_v28, %v2167_v29  ;;  %v313_v37 = vunpack.c.l.bf16 %v281_v33  ;;  %v312_v39 = vunpack.c.h.bf16 %v279_v13  ;;  %v2174_v40 = vcvt.f32.s32 %v2173_v34 }
  0x2e   : > { %v2163_v38 = vsel %vm2160_vm1, %v2161_v31, %v2162_v32  ;;  %v2169_v41 = vcvt.f32.s32 %v2168_v36  ;;  %v2216_v42 = vceil.f32 %v320_v35  ;;  %v2217_v43 = vfloor.f32 %v320_v35 }
  0x2f   : > { %v2164_v44 = vcvt.f32.s32 %v2163_v38  ;;  %vm2215_vm2 = vcmp.lt.s32.totalorder %v320_v35, 0  ;;  %v2181_v45 = vceil.f32 %v313_v37  ;;  %v2182_v46 = vfloor.f32 %v313_v37  ;;  %v287_v35 = vld [vmem:[%s2488_s26 + $0x64] sm:$0xf] }
  0x30   : > { %vm2180_vm3 = vcmp.lt.s32.totalorder %v313_v37, 0  ;;  %v2176_v48 = vceil.f32 %v312_v39  ;;  %v2177_v49 = vfloor.f32 %v312_v39  ;;  %vm2175_vm4 = vcmp.lt.s32.totalorder %v312_v39, 0 }
  0x31   : > { %v2218_v50 = vsel %vm2215_vm2, %v2216_v42, %v2217_v43  ;;  %v315_v51 = vunpack.c.l.bf16 %v283_v47  ;;  %v2183_v52 = vsel %vm2180_vm3, %v2181_v45, %v2182_v46  ;;  %v314_v53 = vunpack.c.h.bf16 %v281_v33 }
  0x32   : > { %394 = vperm.xlu2 %2274, %v2144_v6   ;;  %v2178_v54 = vsel %vm2175_vm4, %v2176_v48, %v2177_v49  ;;  %v321_v55 = vunpack.c.h.bf16 %v288_v30  ;;  %v2219_v56 = vcvt.f32.s32 %v2218_v50  ;;  %v2184_v57 = vcvt.f32.s32 %v2183_v52  ;;  %v2062_v50 = vld [vmem:[%s3333_s1 + $0x8] sm:$0xff] }
  0x33   : > { %391 = vperm.xlu1 %2273, %v2139_v7   ;;  %v2191_v58 = vceil.f32 %v315_v51  ;;  %v2192_v59 = vfloor.f32 %v315_v51  ;;  %v2179_v60 = vcvt.f32.s32 %v2178_v54  ;;  %vm2190_vm5 = vcmp.lt.s32.totalorder %v315_v51, 0  ;;  %874 = vmatpush.bf16.msra.mxu1 %v2062_v50  ;;  %v2045_v54 = vld [vmem:[%s2488_s26] sm:$0xff] }
  0x34   : > { %388 = vperm.xlu0 %2272, %v2134_v10   ;;  %v2186_v61 = vceil.f32 %v314_v53  ;;  %v2187_v62 = vfloor.f32 %v314_v53  ;;  %vm2185_vm6 = vcmp.lt.s32.totalorder %v314_v53, 0  ;;  %v2221_v63 = vceil.f32 %v321_v55  ;;  %v2061_v53 = vld [vmem:[%s3333_s1] sm:$0xff] }
  0x35   : > { %v2222_v0 = vfloor.f32 %v321_v55  ;;  %vm2220_vm7 = vcmp.lt.s32.totalorder %v321_v55, 0  ;;  %v2193_v3 = vsel %vm2190_vm5, %v2191_v58, %v2192_v59  ;;  %v316_v4 = vunpack.c.h.bf16 %v283_v47  ;;  %v2064_v55 = vld [vmem:[%s3334_s2 + $0x8] sm:$0xff] }
  0x36   : > { %v2188_v5 = vsel %vm2185_vm6, %v2186_v61, %v2187_v62  ;;  %v323_v6 = vunpack.c.l.bf16 %v291_v1  ;;  %v322_v8 = vunpack.c.l.bf16 %v290_v2  ;;  %v2194_v9 = vcvt.f32.s32 %v2193_v3  ;;  %645 = vmatpush.bf16.msra.mxu0 %v2064_v55  ;;  %2073 = vmatpush.bf16.msra.mxu3 %v2064_v55 }
  0x37   : > { %v2223_v7 = vsel %vm2220_vm7, %v2221_v63, %v2222_v0  ;;  %v2189_v10 = vcvt.f32.s32 %v2188_v5  ;;  %v2196_v11 = vceil.f32 %v316_v4  ;;  %v2197_v12 = vfloor.f32 %v316_v4  ;;  %875 = vmatpush.bf16.msra.mxu1 %v2061_v53  ;;  %v2047_v63 = vld [vmem:[%s2488_s26 + $0x10] sm:$0xff] }
  0x38   : > { %v2224_v13 = vcvt.f32.s32 %v2223_v7  ;;  %vm2195_vm8 = vcmp.lt.s32.totalorder %v316_v4, 0  ;;  %v2231_v14 = vceil.f32 %v323_v6  ;;  %v2232_v15 = vfloor.f32 %v323_v6 }
  0x39   : > { %vm2230_vm9 = vcmp.lt.s32.totalorder %v323_v6, 0  ;;  %v2226_v17 = vceil.f32 %v322_v8  ;;  %v2227_v18 = vfloor.f32 %v322_v8  ;;  %vm2225_vm10 = vcmp.lt.s32.totalorder %v322_v8, 0 }
  0x3a   : > { %403 = vperm.xlu2 %2274, %v2159_v23   ;;  %v2198_v20 = vsel %vm2195_vm8, %v2196_v11, %v2197_v12  ;;  %v325_v21 = vunpack.c.l.bf16 %v293_v16  ;;  %v2233_v22 = vsel %vm2230_vm9, %v2231_v14, %v2232_v15  ;;  %v324_v23 = vunpack.c.h.bf16 %v291_v1 }
  0x3b   : > { %400 = vperm.xlu1 %2273, %v2154_v24   ;;  %v2228_v24 = vsel %vm2225_vm10, %v2226_v17, %v2227_v18  ;;  %v317_v25 = vunpack.c.l.bf16 %v285_v19  ;;  %v2199_v26 = vcvt.f32.s32 %v2198_v20  ;;  %v319_v38 = vunpack.c.l.bf16 %v287_v35  ;;  %v2049_v20 = vld [vmem:[%s2488_s26 + $0x20] sm:$0xff] }
  0x3c   : > { %397 = vperm.xlu0 %2272, %v2149_v27   ;;  %v2234_v27 = vcvt.f32.s32 %v2233_v22  ;;  %v2241_v28 = vceil.f32 %v325_v21  ;;  %v2242_v29 = vfloor.f32 %v325_v21  ;;  %v2229_v30 = vcvt.f32.s32 %v2228_v24 }
  0x3d   : > { %vm2240_vm11 = vcmp.lt.s32.totalorder %v325_v21, 0  ;;  %v2236_v31 = vceil.f32 %v324_v23  ;;  %v2237_v32 = vfloor.f32 %v324_v23  ;;  %vm2235_vm12 = vcmp.lt.s32.totalorder %v324_v23, 0 }
  0x3e   : > { %v2201_v33 = vceil.f32 %v317_v25  ;;  %v2202_v34 = vfloor.f32 %v317_v25  ;;  %vm2200_vm13 = vcmp.lt.s32.totalorder %v317_v25, 0  ;;  %v2243_v36 = vsel %vm2240_vm11, %v2241_v28, %v2242_v29  ;;  %v2050_v29 = vld [vmem:[%s2488_s26 + $0x28] sm:$0xff] }
  0x3f   : > { %v2238_v37 = vsel %vm2235_vm12, %v2236_v31, %v2237_v32  ;;  %v2212_v45 = vfloor.f32 %v319_v38  ;;  %vm2210_vm14 = vcmp.lt.s32.totalorder %v319_v38, 0  ;;  %vm590_vm0 = vcmask 261120  }
  0x40   : > { %v2203_v39 = vsel %vm2200_vm13, %v2201_v33, %v2202_v34  ;;  %v2239_v42 = vcvt.f32.s32 %v2238_v37  ;;  %1994 = vmatmul.msk.bf16.vlgmr.msra.gmra.mxu1 %vm590_vm0, %v2045_v54  ;;  %v358_v59 = vlaneseq  ;;  %v2432_v3 = vmov 0.0  }
  0x41   : > { %v2204_v43 = vcvt.f32.s32 %v2203_v39 }
  0x42   : > { %412 = vperm.xlu2 %2274, %v2174_v40   ;;  %v318_v40 = vunpack.c.h.bf16 %v285_v19  ;;  %v2527_v62 = vand.u32 127, %v358_v59 }
  0x43   : > { %409 = vperm.xlu1 %2273, %v2169_v41   ;;  %v2244_v41 = vcvt.f32.s32 %v2243_v36 }
  0x44   : > { %406 = vperm.xlu0 %2272, %v2164_v44   ;;  %v2211_v44 = vceil.f32 %v319_v38  ;;  %v2206_v46 = vceil.f32 %v318_v40  ;;  %v2207_v47 = vfloor.f32 %v318_v40  ;;  %vm2205_vm15 = vcmp.lt.s32.totalorder %v318_v40, 0  ;;  %v2051_v40 = vld [vmem:[%s2488_s26 + $0x30] sm:$0xff] }
  0x46   : > { %v2213_v48 = vsel %vm2210_vm14, %v2211_v44, %v2212_v45  ;;  %v2208_v49 = vsel %vm2205_vm15, %v2206_v46, %v2207_v47 }
  0x47   : > { %v2214_v51 = vcvt.f32.s32 %v2213_v48  ;;  %v2209_v52 = vcvt.f32.s32 %v2208_v49 }
  0x4a   : > { %439 = vperm.xlu2 %2274, %v2219_v56   ;;  %v2063_v56 = vld [vmem:[%s3334_s2] sm:$0xff] }
  0x4b   : > { %418 = vperm.xlu1 %2273, %v2184_v57   ;;  %646 = vmatpush.bf16.msra.mxu0 %v2063_v56  ;;  %v2046_v57 = vld [vmem:[%s2488_s26 + $0x8] sm:$0xff] }
  0x4c   : > { %415 = vperm.xlu0 %2272, %v2179_v60   ;;  %2074 = vmatpush.bf16.msra.mxu3 %v2063_v56 }
  0x50   : > { %2075 = vmatpush.bf16.msrb.mxu3 %v2062_v50  ;;  %1995 = vmatmul.msk.bf16.gmra.mxu1 %vm590_vm0, %v2046_v57  ;;  %v2072_v50 = vld [vmem:[%s3335_s3 + $0x38] sm:$0xff] }
  0x51   : > { %1103 = vmatpush.bf16.msra.mxu2 %v2072_v50 }
  0x52   : > { %424 = vperm.xlu2 %2274, %v2194_v9  }
  0x53   : > { %421 = vperm.xlu1 %2273, %v2189_v10   ;;  %v2048_v10 = vld [vmem:[%s2488_s26 + $0x18] sm:$0xff] }
  0x54   : > { %442 = vperm.xlu0 %2272, %v2224_v13   ;;  %2076 = vmatpush.bf16.msrb.mxu3 %v2061_v53 }
  0x5a   : > { %427 = vperm.xlu2 %2274, %v2199_v26  }
  0x5b   : > { %448 = vperm.xlu1 %2273, %v2234_v27  }
  0x5c   : > { %445 = vperm.xlu0 %2272, %v2229_v30  }
  0x60   : > { %1996 = vmatmul.msk.bf16.gmra.mxu1 %vm590_vm0, %v2047_v63  ;;  %v2053_v63 = vld [vmem:[%s2488_s26 + $0x40] sm:$0xff] }
  0x62   : > { %454 = vperm.xlu2 %2274, %v2244_v41  }
  0x63   : > { %451 = vperm.xlu1 %2273, %v2239_v42  }
  0x64   : > { %430 = vperm.xlu0 %2272, %v2204_v43  }
  0x6b   : > { %436 = vperm.xlu1 %2273, %v2214_v51   ;;  %v2052_v51 = vld [vmem:[%s2488_s26 + $0x38] sm:$0xff] }
  0x6c   : > { %433 = vperm.xlu0 %2272, %v2209_v52  }
  0x70   : > { %1997 = vmatmul.msk.bf16.gmra.mxu1 %vm590_vm0, %v2048_v10 }
  0x74   : > { %v374_v58 = vpop.permute.xlu2 %373 }
  0x75   : > { %vm460_vm5 = vcmp.eq.s32.totalorder %v2527_v62, %v374_v58 }
  0x76   : > { %v2572_v22 = vsel %vm460_vm5, 1.0, %v2432_v3 }
  0x7c   : > { %v377_v0 = vpop.permute.xlu2 %376 }
  0x7d   : > { %vm461_vm6 = vcmp.eq.s32.totalorder %v2527_v62, %v377_v0 }
  0x7e   : > { %v2575_v23 = vsel %vm461_vm6, 1.0, %v2432_v3 }
  0x7f   : > { %v560_v25 = vpack.c.bf16 %v2575_v23, %v2572_v22 }
  0x80   : > { %1998 = vmatmul.msk.bf16.gmra.mxu1 %vm590_vm0, %v2049_v20  ;;  %v2059_v20 = vld [vmem:[%s2488_s26 + $0x70] sm:$0xff] }
  0x84   : > { %v386_v7 = vpop.permute.xlu2 %385 }
  0x85   : > { %vm464_vm11 = vcmp.eq.s32.totalorder %v2527_v62, %v386_v7  ;;  %v2058_v7 = vld [vmem:[%s2488_s26 + $0x68] sm:$0xff] }
  0x86   : > { %v2623_v43 = vsel %vm464_vm11, 1.0, %v2432_v3 }
  0x87   : > { %3376 = vst [vmem:[#allocation5_spill] sm:$0xff] %v2623_v43 }
  0x8c   : > { %v2548_v12 = vpop.permute.xlu2 %394 }
  0x8d   : > { %v368_v60 = vpop.permute.xlu1 %367  ;;  %vm467_vm15 = vcmp.eq.s32.totalorder %v2527_v62, %v2548_v12 }
  0x8e   : > { %v362_v61 = vpop.permute.xlu0 %361  ;;  %vm458_vm3 = vcmp.eq.s32.totalorder %v2527_v62, %v368_v60  ;;  %v2654_v54 = vsel %vm467_vm15, 1.0, %v2432_v3  ;;  %v2071_v60 = vld [vmem:[%s3335_s3 + $0x30] sm:$0xff] }
  0x8f   : > { %vm456_vm1 = vcmp.eq.s32.totalorder %v2527_v62, %v362_v61  ;;  %v2551_v13 = vsel %vm458_vm3, 1.0, %v2432_v3  ;;  %3380 = vst [vmem:[#allocation9_spill] sm:$0xff] %v2654_v54  ;;  %1104 = vmatpush.bf16.msra.mxu2 %v2071_v60  ;;  %v2070_v61 = vld [vmem:[%s3335_s3 + $0x28] sm:$0xff] }
  0x90   : > { %v2534_v4 = vsel %vm456_vm1, 1.0, %v2432_v3  ;;  %1999 = vmatmul.msk.bf16.gmra.mxu1 %vm590_vm0, %v2050_v29 }
  0x93   : > { %1105 = vmatpush.bf16.msra.mxu2 %v2070_v61 }
  0x94   : > { %v2563_v19 = vpop.permute.xlu2 %403 }
  0x95   : > { %v371_v1 = vpop.permute.xlu1 %370 }
  0x96   : > { %v365_v2 = vpop.permute.xlu0 %364  ;;  %vm459_vm4 = vcmp.eq.s32.totalorder %v2527_v62, %v371_v1  ;;  %v2069_v1 = vld [vmem:[%s3335_s3 + $0x20] sm:$0xff] }
  0x97   : > { %vm457_vm2 = vcmp.eq.s32.totalorder %v2527_v62, %v365_v2  ;;  %v2554_v14 = vsel %vm459_vm4, 1.0, %v2432_v3  ;;  %1106 = vmatpush.bf16.msra.mxu2 %v2069_v1 }
  0x98   : > { %v2537_v5 = vsel %vm457_vm2, 1.0, %v2432_v3  ;;  %v559_v16 = vpack.c.bf16 %v2554_v14, %v2551_v13 }
  0x99   : > { %v558_v6 = vpack.c.bf16 %v2537_v5, %v2534_v4 }
  0x9b   : > { %1906 = vmatmul.msk.bf16.vlgmr.msra.gmra.mxu0 %vm590_vm0, %v558_v6 }
  0x9c   : > { %v2581_v26 = vpop.permute.xlu2 %412 }
  0x9d   : > { %v383_v8 = vpop.permute.xlu1 %382 }
  0x9e   : > { %v380_v9 = vpop.permute.xlu0 %379  ;;  %vm463_vm7 = vcmp.eq.s32.totalorder %v2527_v62, %v383_v8 }
  0x9f   : > { %vm462_vm8 = vcmp.eq.s32.totalorder %v2527_v62, %v380_v9  ;;  %v2594_v31 = vsel %vm463_vm7, 1.0, %v2432_v3  ;;  %v2068_v9 = vld [vmem:[%s3335_s3 + $0x18] sm:$0xff]  ;;  %vm470_vm7 = vcmp.eq.s32.totalorder %v2527_v62, %v2563_v19  ;;  %v2055_v19 = vld [vmem:[%s2488_s26 + $0x50] sm:$0xff] }
  0xa0   : > { %3373 = vst [vmem:[#allocation2_spill] sm:$0xff] %v2594_v31  ;;  %v2597_v32 = vsel %vm462_vm8, 1.0, %v2432_v3  ;;  %2000 = vmatmul.msk.bf16.gmra.mxu1 %vm590_vm0, %v2051_v40  ;;  %1107 = vmatpush.bf16.msra.mxu2 %v2068_v9 }
  0xa1   : > { %v561_v37 = vpack.c.bf16 %v2594_v31, %v2597_v32 }
  0xa4   : > { %v440_v30 = vpop.permute.xlu2 %439 }
  0xa5   : > { %v2546_v11 = vpop.permute.xlu1 %391  ;;  %vm482_vm9 = vcmp.eq.s32.totalorder %v2527_v62, %v440_v30 }
  0xa6   : > { %v389_v15 = vpop.permute.xlu0 %388  ;;  %v2603_v35 = vsel %vm482_vm9, 1.0, %v2432_v3  ;;  %vm466_vm1 = vcmp.eq.s32.totalorder %v2527_v62, %v2546_v11  ;;  %v2067_v11 = vld [vmem:[%s3335_s3 + $0x10] sm:$0xff]  ;;  %vm473_vm9 = vcmp.eq.s32.totalorder %v2527_v62, %v2581_v26  ;;  %v2746_v26 = vld [vmem:[%s3336_s4] ss:$0 sm:$0xff] }
  0xa7   : > { %3374 = vst [vmem:[#allocation3_spill] sm:$0xff] %v2603_v35  ;;  %vm465_vm12 = vcmp.eq.s32.totalorder %v2527_v62, %v389_v15  ;;  %v2657_v55 = vsel %vm466_vm1, 1.0, %v2432_v3  ;;  %1108 = vmatpush.bf16.msra.mxu2 %v2067_v11  ;;  %v2066_v15 = vld [vmem:[%s3335_s3 + $0x8] sm:$0xff] }
  0xa8   : > { %v2626_v44 = vsel %vm465_vm12, 1.0, %v2432_v3  ;;  %3381 = vst [vmem:[#allocation10_spill] sm:$0xff] %v2657_v55  ;;  %v563_v58 = vpack.c.bf16 %v2654_v54, %v2657_v55 }
  0xa9   : > { %3377 = vst [vmem:[#allocation6_spill] sm:$0xff] %v2626_v44  ;;  %v562_v48 = vpack.c.bf16 %v2626_v44, %v2623_v43 }
  0xab   : > { %1907 = vmatmul.msk.bf16.gmra.mxu0 %vm590_vm0, %v559_v16  ;;  %v2054_v16 = vld [vmem:[%s2488_s26 + $0x48] sm:$0xff]  ;;  %1109 = vmatpush.bf16.msra.mxu2 %v2066_v15 }
  0xac   : > { %v2614_v39 = vpop.permute.xlu2 %424 }
  0xad   : > { %v2559_v17 = vpop.permute.xlu1 %400 }
  0xae   : > { %v2561_v18 = vpop.permute.xlu0 %397  ;;  %vm469_vm4 = vcmp.eq.s32.totalorder %v2527_v62, %v2559_v17  ;;  %v2065_v17 = vld [vmem:[%s3335_s3] sm:$0xff] }
  0xaf   : > { %vm468_vm5 = vcmp.eq.s32.totalorder %v2527_v62, %v2561_v18  ;;  %v2687_v2 = vsel %vm469_vm4, 1.0, %v2432_v3  ;;  %1110 = vmatpush.bf16.msra.mxu2 %v2065_v17  ;;  %vm1770_vm4 = vcmask 1041408  }
  0xb0   : > { %2001 = vmatmul.msk.bf16.gmra.mxu1 %vm590_vm0, %v2052_v51  ;;  %v2690_v6 = vsel %vm468_vm5, 1.0, %v2432_v3  ;;  %v2056_v51 = vld [vmem:[%s2488_s26 + $0x58] sm:$0xff]  ;;  %vm1772_vm5 = vcmask 1042432  }
  0xb1   : > { %v564_v10 = vpack.c.bf16 %v2687_v2, %v2690_v6 }
  0xb4   : > { %v2634_v47 = vpop.permute.xlu2 %427 }
  0xb5   : > { %v2569_v21 = vpop.permute.xlu1 %409  ;;  %vm478_vm15 = vcmp.eq.s32.totalorder %v2527_v62, %v2634_v47 }
  0xb6   : > { %v2577_v24 = vpop.permute.xlu0 %406  ;;  %vm472_vm8 = vcmp.eq.s32.totalorder %v2527_v62, %v2569_v21 }
  0xb7   : > { %vm471_vm6 = vcmp.eq.s32.totalorder %v2527_v62, %v2577_v24 }
  0xb8   : > { %v2716_v18 = vsel %vm471_vm6, 1.0, %v2432_v3  ;;  %vm1774_vm6 = vcmask 1043456  }
  0xb9   : > { %3384 = vst [vmem:[#allocation13_spill] sm:$0xff] %v2716_v18 }
  0xbb   : > { %1908 = vmatmul.msk.bf16.gmra.mxu0 %vm590_vm0, %v560_v25  ;;  %v2720_v25 = vsel %vm470_vm7, 1.0, %v2432_v3  ;;  %vm1776_vm7 = vcmask 1044480  }
  0xbc   : > { %v455_v53 = vpop.permute.xlu2 %454  ;;  %3385 = vst [vmem:[#allocation14_spill] sm:$0xff] %v2720_v25  ;;  %v565_v29 = vpack.c.bf16 %v2716_v18, %v2720_v25 }
  0xbd   : > { %v2584_v27 = vpop.permute.xlu1 %418  ;;  %vm487_vm3 = vcmp.eq.s32.totalorder %v2527_v62, %v455_v53  ;;  %v877_v0 = vpop.f32.mrf.mxu1 }
  0xbe   : > { %v2586_v28 = vpop.permute.xlu0 %415  ;;  %v2663_v57 = vsel %vm487_vm3, 1.0, %v2432_v3  ;;  %vm1768_vm3 = vcmask 1040384  }
  0xbf   : > { %3383 = vst [vmem:[#allocation12_spill] sm:$0xff] %v2663_v57  ;;  %vm474_vm11 = vcmp.eq.s32.totalorder %v2527_v62, %v2586_v28 }
  0xc0   : > { %2002 = vmatmul.msk.bf16.gmra.mxu1 %vm590_vm0, %v2053_v63 }
  0xc5   : > { %v2599_v33 = vpop.permute.xlu1 %421  ;;  %v879_v8 = vpop.f32.mrf.mxu1 }
  0xc6   : > { %v443_v34 = vpop.permute.xlu0 %442  ;;  %vm476_vm12 = vcmp.eq.s32.totalorder %v2527_v62, %v2599_v33 }
  0xc7   : > { %vm483_vm10 = vcmp.eq.s32.totalorder %v2527_v62, %v443_v34  ;;  %v2733_v34 = vsel %vm472_vm8, 1.0, %v2432_v3  ;;  %vm1780_vm8 = vcmask 1046528  }
  0xc8   : > { %v2606_v36 = vsel %vm483_vm10, 1.0, %v2432_v3  ;;  %3386 = vst [vmem:[#allocation15_spill] sm:$0xff] %v2733_v34  ;;  %vm475_vm10 = vcmp.eq.s32.totalorder %v2527_v62, %v2584_v27 }
  0xc9   : > { %3375 = vst [vmem:[#allocation4_spill] sm:$0xff] %v2606_v36  ;;  %v571_v38 = vpack.c.bf16 %v2606_v36, %v2603_v35 }
  0xcb   : > { %1909 = vmatmul.msk.bf16.gmra.mxu0 %vm590_vm0, %v561_v37  ;;  %1919 = vmatmul.msk.bf16.vlgmr.msra.gmra.mxu3 %vm590_vm0, %v571_v38  ;;  %v2060_v37 = vld [vmem:[%s2488_s26 + $0x78] sm:$0xff]  ;;  %v2737_v38 = vsel %vm473_vm9, 1.0, %v2432_v3 }
  0xcc   : > { %2077 = vmatpush.bf16.msra.mxu3 %v2072_v50  ;;  %3387 = vst [vmem:[#allocation16_spill] sm:$0xff] %v2737_v38 }
  0xcd   : > { %v449_v41 = vpop.permute.xlu1 %448  ;;  %v882_v12 = vpop.f32.mrf.mxu1 }
  0xce   : > { %v446_v42 = vpop.permute.xlu0 %445  ;;  %vm485_vm13 = vcmp.eq.s32.totalorder %v2527_v62, %v449_v41 }
  0xcf   : > { %vm484_vm14 = vcmp.eq.s32.totalorder %v2527_v62, %v446_v42  ;;  %v2629_v45 = vsel %vm485_vm13, 1.0, %v2432_v3  ;;  %v566_v42 = vpack.c.bf16 %v2737_v38, %v2733_v34  ;;  %vm477_vm13 = vcmp.eq.s32.totalorder %v2527_v62, %v2614_v39 }
  0xd0   : > { %3378 = vst [vmem:[#allocation7_spill] sm:$0xff] %v2629_v45  ;;  %v2632_v46 = vsel %vm484_vm14, 1.0, %v2432_v3  ;;  %2078 = vmatpush.bf16.msra.mxu3 %v2071_v60  ;;  %2003 = vmatmul.msk.bf16.gmra.mxu1 %vm590_vm0, %v2054_v16  ;;  %v2757_v60 = vsel %vm475_vm10, 1.0, %v2432_v3 }
  0xd1   : > { %3379 = vst [vmem:[#allocation8_spill] sm:$0xff] %v2632_v46  ;;  %v572_v49 = vpack.c.bf16 %v2629_v45, %v2632_v46 }
  0xd2   : > { %3388 = vst [vmem:[#allocation17_spill] sm:$0xff] %v2757_v60 }
  0xd4   : > { %2079 = vmatpush.bf16.msra.mxu3 %v2070_v61  ;;  %v2760_v61 = vsel %vm474_vm11, 1.0, %v2432_v3 }
  0xd5   : > { %v452_v52 = vpop.permute.xlu1 %451  ;;  %v884_v24 = vpop.f32.mrf.mxu1  ;;  %3389 = vst [vmem:[#allocation18_spill] sm:$0xff] %v2760_v61  ;;  %v567_v27 = vpack.c.bf16 %v2757_v60, %v2760_v61 }
  0xd6   : > { %vm486_vm2 = vcmp.eq.s32.totalorder %v2527_v62, %v452_v52 }
  0xd7   : > { %v2660_v56 = vsel %vm486_vm2, 1.0, %v2432_v3 }
  0xd8   : > { %3382 = vst [vmem:[#allocation11_spill] sm:$0xff] %v2660_v56  ;;  %v573_v59 = vpack.c.bf16 %v2663_v57, %v2660_v56  ;;  %2080 = vmatpush.bf16.msra.mxu3 %v2069_v1 }
  0xdb   : > { %1910 = vmatmul.msk.bf16.gmra.mxu0 %vm590_vm0, %v562_v48  ;;  %1920 = vmatmul.msk.bf16.gmra.mxu3 %vm590_vm0, %v572_v49 }
  0xdc   : > { %2081 = vmatpush.bf16.msra.mxu3 %v2068_v9 }
  0xdd   : > { %v887_v30 = vpop.f32.mrf.mxu1 }
  0xe0   : > { %2082 = vmatpush.bf16.msra.mxu3 %v2067_v11  ;;  %2004 = vmatmul.msk.bf16.gmra.mxu1 %vm590_vm0, %v2055_v19 }
  0xe4   : > { %2083 = vmatpush.bf16.msra.mxu3 %v2066_v15 }
  0xe5   : > { %v889_v41 = vpop.f32.mrf.mxu1 }
  0xe8   : > { %2084 = vmatpush.bf16.msra.mxu3 %v2065_v17  ;;  %v2774_v17 = vsel %vm476_vm12, 1.0, %v2432_v3 }
  0xe9   : > { %3390 = vst [vmem:[#allocation19_spill] sm:$0xff] %v2774_v17 }
  0xeb   : > { %1911 = vmatmul.msk.bf16.gmra.mxu0 %vm590_vm0, %v563_v58  ;;  %1921 = vmatmul.msk.bf16.gmra.mxu3 %vm590_vm0, %v573_v59 }
  0xed   : > { %v892_v52 = vpop.f32.mrf.mxu1 }
  0xf0   : > { %2005 = vmatmul.msk.bf16.gmra.mxu1 %vm590_vm0, %v2056_v51 }
  0xf5   : > { %v894_v28 = vpop.f32.mrf.mxu1 }
  0xfb   : > { %1912 = vmatmul.msk.bf16.gmra.mxu0 %vm590_vm0, %v564_v10  ;;  %2007 = vmatmul.msk.bf16.vlgmr.msrb.gmra.mxu3 %vm590_vm0, %v2058_v7  ;;  %v2057_v10 = vld [vmem:[%s2488_s26 + $0x60] sm:$0xff] }
 0x100   : > { %2006 = vmatmul.msk.bf16.gmra.mxu1 %vm590_vm0, %v2057_v10 }
 0x10b   : > { %1913 = vmatmul.msk.bf16.gmra.mxu0 %vm590_vm0, %v565_v29  ;;  %2008 = vmatmul.msk.bf16.gmra.mxu3 %vm590_vm0, %v2059_v20 }
 0x118   : > { %v648_v40 = vpop.f32.mrf.mxu0 }
 0x119   : > { %v878_v21 = vadd.f32 %v877_v0, %v648_v40 }
 0x11b   : > { %1914 = vmatmul.msk.bf16.gmra.mxu0 %vm590_vm0, %v566_v42  ;;  %2009 = vmatmul.msk.bf16.gmra.mxu3 %vm590_vm0, %v2060_v37  ;;  %v958_v49 = vadd.f32 %v2746_v26, %v878_v21  ;;  %v431_v37 = vpop.permute.xlu0 %430 }
 0x11c   : > { %vm479_vm14 = vcmp.eq.s32.totalorder %v2527_v62, %v431_v37 }
 0x11d   : > { %v990_v58 = vmax.f32 %v958_v49, 0.0  ;;  %v2788_v51 = vsel %vm479_vm14, 1.0, %v2432_v3 }
 0x11e   : > { %3392 = vst [vmem:[#allocation21_spill] sm:$0xff] %v2788_v51 }
 0x120   : > { %v650_v48 = vpop.f32.mrf.mxu0 }
 0x121   : > { %v880_v50 = vadd.f32 %v879_v8, %v650_v48 }
 0x123   : > { %v959_v53 = vadd.f32 %v2746_v26, %v880_v50  ;;  %v434_v47 = vpop.permute.xlu0 %433 }
 0x124   : > { %vm480_vm2 = vcmp.eq.s32.totalorder %v2527_v62, %v434_v47 }
 0x125   : > { %v991_v59 = vmax.f32 %v959_v53, 0.0 }
 0x127   : > { %v1022_v63 = vpack.c.bf16 %v991_v59, %v990_v58 }
 0x128   : > { %v653_v0 = vpop.f32.mrf.mxu0 }
 0x129   : > { %1111 = vmatmul.bf16.vlgmr.msra.gmra.mxu2 %v1022_v63  ;;  %v883_v1 = vadd.f32 %v882_v12, %v653_v0  ;;  %v897_v12 = vpop.f32.mrf.mxu1  ;;  %v437_v0 = vpop.permute.xlu1 %436 }
 0x12a   : > { %vm481_vm1 = vcmp.eq.s32.totalorder %v2527_v62, %v437_v0 }
 0x12b   : > { %1915 = vmatmul.msk.bf16.gmra.mxu0 %vm590_vm0, %v567_v27  ;;  %v960_v8 = vadd.f32 %v2746_v26, %v883_v1 }
 0x12d   : > { %v992_v15 = vmax.f32 %v960_v8, 0.0 }
 0x130   : > { %v655_v7 = vpop.f32.mrf.mxu0 }
 0x131   : > { %v885_v9 = vadd.f32 %v884_v24, %v655_v7  ;;  %v2777_v24 = vsel %vm477_vm13, 1.0, %v2432_v3  ;;  %v899_v40 = vpop.f32.mrf.mxu1 }
 0x132   : > { %3391 = vst [vmem:[#allocation20_spill] sm:$0xff] %v2777_v24  ;;  %v568_v33 = vpack.c.bf16 %v2777_v24, %v2774_v17 }
 0x133   : > { %v961_v11 = vadd.f32 %v2746_v26, %v885_v9 }
 0x135   : > { %v993_v16 = vmax.f32 %v961_v11, 0.0 }
 0x137   : > { %v1023_v20 = vpack.c.bf16 %v993_v16, %v992_v15  ;;  %v2801_v15 = vsel %vm481_vm1, 1.0, %v2432_v3 }
 0x138   : > { %v658_v29 = vpop.f32.mrf.mxu0  ;;  %3394 = vst [vmem:[#allocation23_spill] sm:$0xff] %v2801_v15 }
 0x139   : > { %1116 = vmatmul.bf16.gmra.mxu2 %v1023_v20  ;;  %v888_v19 = vadd.f32 %v887_v30, %v658_v29  ;;  %v2791_v30 = vsel %vm478_vm15, 1.0, %v2432_v3  ;;  %v902_v59 = vpop.f32.mrf.mxu1 }
 0x13a   : > { %3393 = vst [vmem:[#allocation22_spill] sm:$0xff] %v2791_v30 }
 0x13b   : > { %1916 = vmatmul.msk.bf16.gmra.mxu0 %vm590_vm0, %v568_v33  ;;  %v962_v42 = vadd.f32 %v2746_v26, %v888_v19 }
 0x13d   : > { %v994_v49 = vmax.f32 %v962_v42, 0.0 }
 0x140   : > { %v660_v39 = vpop.f32.mrf.mxu0 }
 0x141   : > { %v890_v21 = vadd.f32 %v889_v41, %v660_v39  ;;  %v569_v41 = vpack.c.bf16 %v2788_v51, %v2791_v30  ;;  %v904_v9 = vpop.f32.mrf.mxu1 }
 0x143   : > { %v963_v48 = vadd.f32 %v2746_v26, %v890_v21 }
 0x145   : > { %v995_v50 = vmax.f32 %v963_v48, 0.0 }
 0x147   : > { %v1024_v53 = vpack.c.bf16 %v995_v50, %v994_v49 }
 0x148   : > { %v663_v58 = vpop.f32.mrf.mxu0 }
 0x149   : > { %1121 = vmatmul.bf16.gmra.mxu2 %v1024_v53  ;;  %v893_v63 = vadd.f32 %v892_v52, %v663_v58  ;;  %v2804_v52 = vsel %vm480_vm2, 1.0, %v2432_v3  ;;  %v907_v29 = vpop.f32.mrf.mxu1 }
 0x14a   : > { %3395 = vst [vmem:[#allocation24_spill] sm:$0xff] %v2804_v52 }
 0x14b   : > { %1917 = vmatmul.msk.bf16.gmra.mxu0 %vm590_vm0, %v569_v41  ;;  %v964_v1 = vadd.f32 %v2746_v26, %v893_v63 }
 0x14d   : > { %v996_v10 = vmax.f32 %v964_v1, 0.0 }
 0x150   : > { %v665_v27 = vpop.f32.mrf.mxu0 }
 0x151   : > { %v895_v7 = vadd.f32 %v894_v28, %v665_v27  ;;  %v570_v28 = vpack.c.bf16 %v2801_v15, %v2804_v52  ;;  %v909_v49 = vpop.f32.mrf.mxu1 }
 0x153   : > { %v965_v8 = vadd.f32 %v2746_v26, %v895_v7 }
 0x155   : > { %v997_v11 = vmax.f32 %v965_v8, 0.0 }
 0x157   : > { %v1025_v16 = vpack.c.bf16 %v997_v11, %v996_v10 }
 0x158   : > { %v668_v20 = vpop.f32.mrf.mxu0 }
 0x159   : > { %1126 = vmatmul.bf16.gmra.mxu2 %v1025_v16  ;;  %v898_v62 = vadd.f32 %v897_v12, %v668_v20  ;;  %v912_v63 = vpop.f32.mrf.mxu1 }
 0x15b   : > { %1918 = vmatmul.msk.bf16.gmra.mxu0 %vm590_vm0, %v570_v28  ;;  %v966_v19 = vadd.f32 %v2746_v26, %v898_v62 }
 0x15d   : > { %v998_v42 = vmax.f32 %v966_v19, 0.0 }
 0x160   : > { %v670_v33 = vpop.f32.mrf.mxu0 }
 0x161   : > { %v900_v37 = vadd.f32 %v899_v40, %v670_v33  ;;  %v914_v1 = vpop.f32.mrf.mxu1 }
 0x163   : > { %v967_v39 = vadd.f32 %v2746_v26, %v900_v37 }
 0x165   : > { %v999_v21 = vmax.f32 %v967_v39, 0.0 }
 0x167   : > { %v1026_v3 = vpack.c.bf16 %v999_v21, %v998_v42 }
 0x168   : > { %v673_v48 = vpop.f32.mrf.mxu0 }
 0x169   : > { %1131 = vmatmul.bf16.gmra.mxu2 %v1026_v3  ;;  %v903_v50 = vadd.f32 %v902_v59, %v673_v48  ;;  %v917_v28 = vpop.f32.mrf.mxu1 }
 0x16b   : > { %v968_v58 = vadd.f32 %v2746_v26, %v903_v50  ;;  %v2817_v50 = vpop.f32.mrf.mxu3 }
 0x16d   : > { %v1000_v0 = vmax.f32 %v968_v58, 0.0 }
 0x170   : > { %v675_v53 = vpop.f32.mrf.mxu0 }
 0x171   : > { %v905_v41 = vadd.f32 %v904_v9, %v675_v53  ;;  %v919_v37 = vpop.f32.mrf.mxu1 }
 0x173   : > { %v969_v12 = vadd.f32 %v2746_v26, %v905_v41 }
 0x175   : > { %v1001_v47 = vmax.f32 %v969_v12, 0.0 }
 0x177   : > { %v1027_v27 = vpack.c.bf16 %v1001_v47, %v1000_v0  ;;  %v2820_v0 = vpop.f32.mrf.mxu3 }
 0x178   : > { %v678_v40 = vpop.f32.mrf.mxu0 }
 0x179   : > { %1136 = vmatmul.bf16.gmra.mxu2 %v1027_v27  ;;  %v908_v7 = vadd.f32 %v907_v29, %v678_v40  ;;  %v922_v53 = vpop.f32.mrf.mxu1 }
 0x17b   : > { %v970_v10 = vadd.f32 %v2746_v26, %v908_v7 }
 0x17d   : > { %v1002_v16 = vmax.f32 %v970_v10, 0.0  ;;  %v2826_v10 = vld [vmem:[%s3336_s4 + $0x1] ss:$0 sm:$0xff] }
 0x180   : > { %v680_v8 = vpop.f32.mrf.mxu0 }
 0x181   : > { %v910_v11 = vadd.f32 %v909_v49, %v680_v8  ;;  %v924_v27 = vpop.f32.mrf.mxu1 }
 0x183   : > { %v971_v59 = vadd.f32 %v2746_v26, %v910_v11 }
 0x185   : > { %v1003_v20 = vmax.f32 %v971_v59, 0.0  ;;  %v2828_v59 = vpop.f32.mrf.mxu3 }
 0x187   : > { %v1028_v9 = vpack.c.bf16 %v1003_v20, %v1002_v16 }
 0x188   : > { %v683_v62 = vpop.f32.mrf.mxu0 }
 0x189   : > { %1141 = vmatmul.bf16.gmra.mxu2 %v1028_v9  ;;  %v913_v33 = vadd.f32 %v912_v63, %v683_v62 }
 0x18b   : > { %v972_v39 = vadd.f32 %v2746_v26, %v913_v33 }
 0x18d   : > { %v1004_v21 = vmax.f32 %v972_v39, 0.0 }
 0x190   : > { %v685_v19 = vpop.f32.mrf.mxu0 }
 0x191   : > { %v915_v42 = vadd.f32 %v914_v1, %v685_v19 }
 0x193   : > { %v973_v29 = vadd.f32 %v2746_v26, %v915_v42 }
 0x195   : > { %v1005_v3 = vmax.f32 %v973_v29, 0.0 }
 0x197   : > { %v1029_v48 = vpack.c.bf16 %v1005_v3, %v1004_v21  ;;  %v2840_v3 = vpop.f32.mrf.mxu3 }
 0x198   : > { %v688_v49 = vpop.f32.mrf.mxu0 }
 0x199   : > { %1146 = vmatmul.bf16.gmra.mxu2 %v1029_v48  ;;  %v918_v58 = vadd.f32 %v917_v28, %v688_v49  ;;  %v927_v28 = vpop.f32.mrf.mxu1 }
 0x19b   : > { %v974_v12 = vadd.f32 %v2746_v26, %v918_v58 }
 0x19d   : > { %v1006_v40 = vmax.f32 %v974_v12, 0.0 }
 0x1a0   : > { %v690_v41 = vpop.f32.mrf.mxu0 }
 0x1a1   : > { %v920_v63 = vadd.f32 %v919_v37, %v690_v41 }
 0x1a3   : > { %v975_v47 = vadd.f32 %v2746_v26, %v920_v63 }
 0x1a5   : > { %v1007_v1 = vmax.f32 %v975_v47, 0.0 }
 0x1a7   : > { %v1030_v7 = vpack.c.bf16 %v1007_v1, %v1006_v40  ;;  %v2849_v40 = vpop.f32.mrf.mxu3 }
 0x1a8   : > { %v693_v8 = vpop.f32.mrf.mxu0 }
 0x1a9   : > { %1151 = vmatmul.bf16.gmra.mxu2 %v1030_v7  ;;  %v923_v16 = vadd.f32 %v922_v53, %v693_v8  ;;  %v929_v53 = vpop.f32.mrf.mxu1 }
 0x1ab   : > { %v976_v33 = vadd.f32 %v2746_v26, %v923_v16 }
 0x1ac   : > { %v1112_v11 = vpop.f32.mrf.mxu2 }
 0x1ad   : > { %v2831_v20 = vadd.f32 %v2826_v10, %v1112_v11  ;;  %v1008_v42 = vmax.f32 %v976_v33, 0.0 }
 0x1af   : > { %v1192_v9 = vsel %vm590_vm0, %v2831_v20, -inf }
 0x1b0   : > { %1193 = vmax.xlane.f32.xlu2 %v1192_v9  ;;  %v695_v62 = vpop.f32.mrf.mxu0 }
 0x1b1   : > { %v925_v19 = vadd.f32 %v924_v27, %v695_v62  ;;  %v932_v8 = vpop.f32.mrf.mxu1 }
 0x1b3   : > { %v977_v37 = vadd.f32 %v2746_v26, %v925_v19 }
 0x1b4   : > { %v1114_v39 = vpop.f32.mrf.mxu2 }
 0x1b5   : > { %v1009_v29 = vmax.f32 %v977_v37, 0.0  ;;  %v2838_v21 = vadd.f32 %v2826_v10, %v1114_v39  ;;  %v2858_v39 = vpop.f32.mrf.mxu3 }
 0x1b7   : > { %v1195_v48 = vsel %vm590_vm0, %v2838_v21, -inf  ;;  %v1031_v49 = vpack.c.bf16 %v1009_v29, %v1008_v42 }
 0x1b8   : > { %1196 = vmax.xlane.f32.xlu0 %v1195_v48  ;;  %v698_v58 = vpop.f32.mrf.mxu0 }
 0x1b9   : > { %1156 = vmatmul.bf16.gmra.mxu2 %v1031_v49  ;;  %v928_v12 = vadd.f32 %v927_v28, %v698_v58  ;;  %v934_v42 = vpop.f32.mrf.mxu1 }
 0x1bb   : > { %v978_v1 = vadd.f32 %v2746_v26, %v928_v12 }
 0x1bc   : > { %v1117_v41 = vpop.f32.mrf.mxu2 }
 0x1bd   : > { %v2845_v63 = vadd.f32 %v2826_v10, %v1117_v41  ;;  %v1010_v9 = vmax.f32 %v978_v1, 0.0  ;;  %v942_v1 = vpop.f32.mrf.mxu3 }
 0x1bf   : > { %v1198_v47 = vsel %vm590_vm0, %v2845_v63, -inf }
 0x1c0   : > { %1199 = vmax.xlane.f32.xlu1 %v1198_v47  ;;  %v700_v27 = vpop.f32.mrf.mxu0 }
 0x1c1   : > { %v930_v7 = vadd.f32 %v929_v53, %v700_v27 }
 0x1c3   : > { %v979_v11 = vadd.f32 %v2746_v26, %v930_v7 }
 0x1c4   : > { %v1119_v16 = vpop.f32.mrf.mxu2 }
 0x1c5   : > { %v1011_v62 = vmax.f32 %v979_v11, 0.0  ;;  %v2854_v28 = vadd.f32 %v2826_v10, %v1119_v16 }
 0x1c7   : > { %v1201_v33 = vsel %vm590_vm0, %v2854_v28, -inf  ;;  %v1032_v19 = vpack.c.bf16 %v1011_v62, %v1010_v9 }
 0x1c8   : > { %1202 = vmax.xlane.f32.xlu2 %v1201_v33  ;;  %v703_v37 = vpop.f32.mrf.mxu0 }
 0x1c9   : > { %1161 = vmatmul.bf16.gmra.mxu2 %v1032_v19  ;;  %v933_v48 = vadd.f32 %v932_v8, %v703_v37  ;;  %v937_v8 = vpop.f32.mrf.mxu1 }
 0x1cb   : > { %v980_v41 = vadd.f32 %v2746_v26, %v933_v48 }
 0x1cc   : > { %v1122_v29 = vpop.f32.mrf.mxu2 }
 0x1cd   : > { %v2861_v49 = vadd.f32 %v2826_v10, %v1122_v29  ;;  %v1012_v7 = vmax.f32 %v980_v41, 0.0  ;;  %v944_v29 = vpop.f32.mrf.mxu3 }
 0x1cf   : > { %v1204_v53 = vsel %vm590_vm0, %v2861_v49, -inf }
 0x1d0   : > { %1205 = vmax.xlane.f32.xlu2 %v1204_v53  ;;  %v705_v58 = vpop.f32.mrf.mxu0 }
 0x1d1   : > { %v935_v12 = vadd.f32 %v934_v42, %v705_v58  ;;  %v939_v53 = vpop.f32.mrf.mxu1 }
 0x1d3   : > { %v981_v47 = vadd.f32 %v2746_v26, %v935_v12 }
 0x1d4   : > { %v1124_v27 = vpop.f32.mrf.mxu2 }
 0x1d5   : > { %v1013_v11 = vmax.f32 %v981_v47, 0.0  ;;  %v2868_v16 = vadd.f32 %v2826_v10, %v1124_v27 }
 0x1d7   : > { %v1033_v9 = vpack.c.bf16 %v1013_v11, %v1012_v7  ;;  %v1207_v62 = vsel %vm590_vm0, %v2868_v16, -inf }
 0x1d8   : > { %1208 = vmax.xlane.f32.xlu0 %v1207_v62  ;;  %v708_v33 = vpop.f32.mrf.mxu0 }
 0x1d9   : > { %1166 = vmatmul.bf16.vlgmr.msra.gmra.mxu3 %v1033_v9  ;;  %v938_v37 = vadd.f32 %v937_v8, %v708_v33  ;;  %v947_v33 = vpop.f32.mrf.mxu3 }
 0x1db   : > { %v982_v41 = vadd.f32 %v2746_v26, %v938_v37  ;;  %v943_v37 = vadd.f32 %v942_v1, %v2817_v50 }
 0x1dc   : > { %v1127_v19 = vpop.f32.mrf.mxu2 }
 0x1dd   : > { %v2873_v42 = vadd.f32 %v2826_v10, %v1127_v19  ;;  %v1014_v7 = vmax.f32 %v982_v41, 0.0  ;;  %v945_v19 = vadd.f32 %v944_v29, %v2820_v0 }
 0x1df   : > { %v1210_v48 = vsel %vm590_vm0, %v2873_v42, -inf }
 0x1e0   : > { %1211 = vmax.xlane.f32.xlu0 %v1210_v48  ;;  %v710_v58 = vpop.f32.mrf.mxu0 }
 0x1e1   : > { %v940_v12 = vadd.f32 %v939_v53, %v710_v58  ;;  %v985_v58 = vadd.f32 %v2746_v26, %v945_v19 }
 0x1e3   : > { %v983_v47 = vadd.f32 %v2746_v26, %v940_v12  ;;  %v984_v12 = vadd.f32 %v2746_v26, %v943_v37 }
 0x1e4   : > { %v1129_v27 = vpop.f32.mrf.mxu2 }
 0x1e5   : > { %v1015_v11 = vmax.f32 %v983_v47, 0.0  ;;  %v2880_v8 = vadd.f32 %v2826_v10, %v1129_v27  ;;  %v1017_v47 = vmax.f32 %v985_v58, 0.0  ;;  %v949_v27 = vpop.f32.mrf.mxu3 }
 0x1e6   : > { %v950_v29 = vadd.f32 %v949_v27, %v2840_v3 }
 0x1e7   : > { %3396 = vst [vmem:[#allocation25_spill] sm:$0xff] %v2880_v8  ;;  %v1213_v9 = vsel %vm590_vm0, %v2880_v8, -inf  ;;  %v1034_v62 = vpack.c.bf16 %v1015_v11, %v1014_v7  ;;  %v1016_v11 = vmax.f32 %v984_v12, 0.0 }
 0x1e8   : > { %1214 = vmax.xlane.f32.xlu0 %v1213_v9  ;;  %v987_v37 = vadd.f32 %v2746_v26, %v950_v29 }
 0x1e9   : > { %1171 = vmatmul.bf16.gmra.mxu3 %v1034_v62  ;;  %v1035_v1 = vpack.c.bf16 %v1017_v47, %v1016_v11  ;;  %v948_v62 = vadd.f32 %v947_v33, %v2828_v59 }
 0x1ea   : > { %v1019_v12 = vmax.f32 %v987_v37, 0.0 }
 0x1ec   : > { %v1132_v48 = vpop.f32.mrf.mxu2 }
 0x1ed   : > { %v2887_v53 = vadd.f32 %v2826_v10, %v1132_v48  ;;  %v952_v48 = vpop.f32.mrf.mxu3 }
 0x1ef   : > { %v1216_v41 = vsel %vm590_vm0, %v2887_v53, -inf }
 0x1f0   : > { %1217 = vmax.xlane.f32.xlu1 %v1216_v41  ;;  %v986_v41 = vadd.f32 %v2746_v26, %v948_v62 }
 0x1f4   : > { %v1134_v7 = vpop.f32.mrf.mxu2 }
 0x1f5   : > { %v2894_v0 = vadd.f32 %v2826_v10, %v1134_v7  ;;  %v1018_v7 = vmax.f32 %v986_v41, 0.0  ;;  %v954_v27 = vpop.f32.mrf.mxu3 }
 0x1f6   : > { %v955_v11 = vadd.f32 %v954_v27, %v2858_v39 }
 0x1f7   : > { %3397 = vst [vmem:[#allocation26_spill] sm:$0xff] %v2894_v0  ;;  %v1219_v50 = vsel %vm590_vm0, %v2894_v0, -inf  ;;  %v1036_v33 = vpack.c.bf16 %v1019_v12, %v1018_v7 }
 0x1f8   : > { %1220 = vmax.xlane.f32.xlu2 %v1219_v50 }
 0x1f9   : > { %1176 = vmatmul.bf16.gmra.mxu3 %v1035_v1  ;;  %v953_v1 = vadd.f32 %v952_v48, %v2849_v40 }
 0x1fb   : > { %v988_v37 = vadd.f32 %v2746_v26, %v953_v1 }
 0x1fc   : > { %v1137_v9 = vpop.f32.mrf.mxu2 }
 0x1fd   : > { %v2901_v19 = vadd.f32 %v2826_v10, %v1137_v9  ;;  %v989_v9 = vadd.f32 %v2746_v26, %v955_v11  ;;  %v1020_v12 = vmax.f32 %v988_v37, 0.0 }
 0x1ff   : > { %3398 = vst [vmem:[#allocation27_spill] sm:$0xff] %v2901_v19  ;;  %v1222_v58 = vsel %vm590_vm0, %v2901_v19, -inf }
 0x200   : > { %1223 = vmax.xlane.f32.xlu0 %v1222_v58  ;;  %v1021_v58 = vmax.f32 %v989_v9, 0.0 }
 0x202   : > { %v1037_v39 = vpack.c.bf16 %v1021_v58, %v1020_v12 }
 0x204   : > { %v1139_v47 = vpop.f32.mrf.mxu2 }
 0x205   : > { %v2908_v3 = vadd.f32 %v2826_v10, %v1139_v47 }
 0x207   : > { %3399 = vst [vmem:[#allocation28_spill] sm:$0xff] %v2908_v3  ;;  %v1225_v59 = vsel %vm590_vm0, %v2908_v3, -inf }
 0x208   : > { %1226 = vmax.xlane.f32.xlu1 %v1225_v59 }
 0x209   : > { %1181 = vmatmul.bf16.gmra.mxu3 %v1036_v33 }
 0x20c   : > { %v1142_v50 = vpop.f32.mrf.mxu2 }
 0x20d   : > { %v2915_v29 = vadd.f32 %v2826_v10, %v1142_v50 }
 0x20f   : > { %v1228_v62 = vsel %vm590_vm0, %v2915_v29, -inf }
 0x210   : > { %1229 = vmax.xlane.f32.xlu1 %v1228_v62 }
 0x214   : > { %v1144_v41 = vpop.f32.mrf.mxu2 }
 0x215   : > { %v2922_v47 = vadd.f32 %v2826_v10, %v1144_v41 }
 0x217   : > { %v1231_v40 = vsel %vm590_vm0, %v2922_v47, -inf }
 0x218   : > { %1232 = vmax.xlane.f32.xlu2 %v1231_v40 }
 0x219   : > { %1186 = vmatmul.bf16.gmra.mxu3 %v1037_v39 }
 0x21c   : > { %v1147_v48 = vpop.f32.mrf.mxu2 }
 0x21d   : > { %v2927_v7 = vadd.f32 %v2826_v10, %v1147_v48 }
 0x21f   : > { %3400 = vst [vmem:[#allocation29_spill] sm:$0xff] %v2927_v7  ;;  %v1234_v59 = vsel %vm590_vm0, %v2927_v7, -inf }
 0x220   : > { %1235 = vmax.xlane.f32.xlu1 %v1234_v59 }
 0x223   : > { %v2931_v26 = vpop.xlane.xlu2 %1193 }
 0x224   : > { %v1288_v33 = vsub.f32 %v2831_v20, %v2931_v26  ;;  %v1149_v27 = vpop.f32.mrf.mxu2 }
 0x225   : > { %v2936_v11 = vadd.f32 %v2826_v10, %v1149_v27 }
 0x226   : > { %v1320_v50 = vmul.f32 1.442695, %v1288_v33 }
 0x227   : > { %3401 = vst [vmem:[#allocation30_spill] sm:$0xff] %v2936_v11  ;;  %v1237_v1 = vsel %vm590_vm0, %v2936_v11, -inf }
 0x228   : > { %2279 = vpow2.f32 %v1320_v50  ;;  %1238 = vmax.xlane.f32.xlu2 %v1237_v1 }
 0x22b   : > { %v2940_v9 = vpop.xlane.xlu0 %1196 }
 0x22c   : > { %v1289_v62 = vsub.f32 %v2838_v21, %v2940_v9  ;;  %v1152_v37 = vpop.f32.mrf.mxu2 }
 0x22d   : > { %v2945_v58 = vadd.f32 %v2826_v10, %v1152_v37 }
 0x22e   : > { %v2280_v41 = vpop.eup %2279  ;;  %v1322_v12 = vmul.f32 1.442695, %v1289_v62 }
 0x22f   : > { %3402 = vst [vmem:[#allocation31_spill] sm:$0xff] %v2945_v58  ;;  %v1384_v40 = vsel %vm590_vm0, %v2280_v41, 0.0  ;;  %v1240_v39 = vsel %vm590_vm0, %v2945_v58, -inf }
 0x230   : > { %2281 = vpow2.f32 %v1322_v12  ;;  %1385 = vadd.xlane.f32.xlu0 %v1384_v40  ;;  %1241 = vmax.xlane.f32.xlu1 %v1240_v39 }
 0x233   : > { %v2950_v48 = vpop.xlane.xlu1 %1199 }
 0x234   : > { %v1290_v59 = vsub.f32 %v2845_v63, %v2950_v48  ;;  %v1154_v33 = vpop.f32.mrf.mxu2 }
 0x235   : > { %v2955_v27 = vadd.f32 %v2826_v10, %v1154_v33 }
 0x236   : > { %v2282_v50 = vpop.eup %2281  ;;  %v1324_v1 = vmul.f32 1.442695, %v1290_v59 }
 0x237   : > { %v1243_v62 = vsel %vm590_vm0, %v2955_v27, -inf  ;;  %v1387_v37 = vsel %vm590_vm0, %v2282_v50, 0.0 }
 0x238   : > { %2283 = vpow2.f32 %v1324_v1  ;;  %1244 = vmax.xlane.f32.xlu2 %v1243_v62  ;;  %1388 = vadd.xlane.f32.xlu1 %v1387_v37 }
 0x23b   : > { %v2960_v41 = vpop.xlane.xlu2 %1202 }
 0x23c   : > { %v1157_v12 = vpop.f32.mrf.mxu2  ;;  %v1291_v18 = vsub.f32 %v2854_v28, %v2960_v41 }
 0x23d   : > { %v2963_v40 = vadd.f32 %v2826_v10, %v1157_v12 }
 0x23e   : > { %v2284_v39 = vpop.eup %2283 }
 0x23f   : > { %3403 = vst [vmem:[#allocation32_spill] sm:$0xff] %v2963_v40  ;;  %v1390_v33 = vsel %vm590_vm0, %v2284_v39, 0.0  ;;  %v1246_v59 = vsel %vm590_vm0, %v2963_v40, -inf }
 0x240   : > { %1391 = vadd.xlane.f32.xlu0 %v1390_v33  ;;  %1247 = vmax.xlane.f32.xlu2 %v1246_v59 }
 0x243   : > { %v2968_v57 = vpop.xlane.xlu2 %1205 }
 0x244   : > { %v1159_v50 = vpop.f32.mrf.mxu2  ;;  %v1292_v62 = vsub.f32 %v2861_v49, %v2968_v57 }
 0x245   : > { %v2971_v1 = vadd.f32 %v2826_v10, %v1159_v50 }
 0x246   : > { %v1328_v12 = vmul.f32 1.442695, %v1292_v62 }
 0x247   : > { %v1249_v37 = vsel %vm590_vm0, %v2971_v1, -inf }
 0x248   : > { %1250 = vmax.xlane.f32.xlu0 %v1249_v37  ;;  %2285 = vpow2.f32 %v1328_v12 }
 0x24b   : > { %v2977_v39 = vpop.xlane.xlu0 %1208 }
 0x24c   : > { %v1162_v56 = vpop.f32.mrf.mxu2  ;;  %v1293_v59 = vsub.f32 %v2868_v16, %v2977_v39 }
 0x24d   : > { %v2980_v33 = vadd.f32 %v2826_v10, %v1162_v56 }
 0x24e   : > { %v1330_v36 = vmul.f32 1.442695, %v1293_v59  ;;  %v2286_v45 = vpop.eup %2285 }
 0x24f   : > { %v1252_v50 = vsel %vm590_vm0, %v2980_v33, -inf  ;;  %v1396_v52 = vsel %vm590_vm0, %v2286_v45, 0.0 }
 0x250   : > { %1253 = vmax.xlane.f32.xlu2 %v1252_v50  ;;  %2287 = vpow2.f32 %v1330_v36 }
 0x253   : > { %v2986_v46 = vpop.xlane.xlu0 %1211 }
 0x254   : > { %v1294_v62 = vsub.f32 %v2873_v42, %v2986_v46  ;;  %v1164_v37 = vpop.f32.mrf.mxu2 }
 0x255   : > { %v2991_v35 = vadd.f32 %v2826_v10, %v1164_v37 }
 0x256   : > { %v1332_v56 = vmul.f32 1.442695, %v1294_v62  ;;  %v2288_v59 = vpop.eup %2287 }
 0x257   : > { %v1255_v12 = vsel %vm590_vm0, %v2991_v35, -inf  ;;  %v1399_v30 = vsel %vm590_vm0, %v2288_v59, 0.0 }
 0x258   : > { %2289 = vpow2.f32 %v1332_v56  ;;  %1256 = vmax.xlane.f32.xlu0 %v1255_v12  ;;  %1397 = vadd.xlane.f32.xlu2 %v1396_v52 }
 0x25c   : > { %v1167_v50 = vpop.f32.mrf.mxu3 }
 0x25d   : > { %v2999_v36 = vadd.f32 %v2826_v10, %v1167_v50 }
 0x25e   : > { %v2290_v15 = vpop.eup %2289 }
 0x25f   : > { %v1402_v51 = vsel %vm590_vm0, %v2290_v15, 0.0 }
 0x260   : > { %1400 = vadd.xlane.f32.xlu0 %v1399_v30  ;;  %1403 = vadd.xlane.f32.xlu1 %v1402_v51  ;;  %v1258_v30 = vsel %vm590_vm0, %v2999_v36, -inf  ;;  %v3012_v51 = vpop.xlane.xlu0 %1214 }
 0x261   : > { %3404 = vst [vmem:[#allocation33_spill] sm:$0xff] %v3012_v51 }
 0x263   : > { %v3001_v62 = vpop.xlane.xlu1 %1217 }
 0x264   : > { %v1296_v45 = vsub.f32 %v2887_v53, %v3001_v62  ;;  %v1169_v37 = vpop.f32.mrf.mxu3 }
 0x265   : > { %v3006_v52 = vadd.f32 %v2826_v10, %v1169_v37 }
 0x266   : > { %v1336_v56 = vmul.f32 1.442695, %v1296_v45 }
 0x267   : > { %v1261_v12 = vsel %vm590_vm0, %v3006_v52, -inf }
 0x268   : > { %2291 = vpow2.f32 %v1336_v56  ;;  %1262 = vmax.xlane.f32.xlu2 %v1261_v12  ;;  %1259 = vmax.xlane.f32.xlu0 %v1258_v30 }
 0x26b   : > { %v3014_v15 = vpop.xlane.xlu2 %1220 }
 0x26c   : > { %v1297_v59 = vsub.f32 %v2894_v0, %v3014_v15  ;;  %v1172_v50 = vpop.f32.mrf.mxu3 }
 0x26d   : > { %v3019_v37 = vadd.f32 %v2826_v10, %v1172_v50 }
 0x26e   : > { %v2292_v45 = vpop.eup %2291  ;;  %v1338_v17 = vmul.f32 1.442695, %v1297_v59 }
 0x26f   : > { %v1264_v24 = vsel %vm590_vm0, %v3019_v37, -inf  ;;  %v1408_v56 = vsel %vm590_vm0, %v2292_v45, 0.0 }
 0x270   : > { %2293 = vpow2.f32 %v1338_v17  ;;  %1265 = vmax.xlane.f32.xlu0 %v1264_v24  ;;  %1409 = vadd.xlane.f32.xlu1 %v1408_v56 }
 0x273   : > { %v3024_v12 = vpop.xlane.xlu0 %1223 }
 0x274   : > { %v1174_v30 = vpop.f32.mrf.mxu3  ;;  %v1298_v50 = vsub.f32 %v2901_v19, %v3024_v12 }
 0x275   : > { %v3027_v60 = vadd.f32 %v2826_v10, %v1174_v30 }
 0x276   : > { %v2294_v61 = vpop.eup %2293  ;;  %v1340_v17 = vmul.f32 1.442695, %v1298_v50 }
 0x277   : > { %v1411_v59 = vsel %vm590_vm0, %v2294_v61, 0.0  ;;  %v1267_v38 = vsel %vm590_vm0, %v3027_v60, -inf }
 0x278   : > { %1412 = vadd.xlane.f32.xlu2 %v1411_v59  ;;  %1268 = vmax.xlane.f32.xlu1 %v1267_v38  ;;  %2295 = vpow2.f32 %v1340_v17 }
 0x27b   : > { %v3034_v24 = vpop.xlane.xlu1 %1226 }
 0x27c   : > { %v1177_v45 = vpop.f32.mrf.mxu3 }
 0x27d   : > { %v3037_v56 = vadd.f32 %v2826_v10, %v1177_v45 }
 0x27e   : > { %v2296_v61 = vpop.eup %2295 }
 0x27f   : > { %v1270_v30 = vsel %vm590_vm0, %v3037_v56, -inf  ;;  %v1414_v50 = vsel %vm590_vm0, %v2296_v61, 0.0 }
 0x280   : > { %1271 = vmax.xlane.f32.xlu1 %v1270_v30 }
 0x283   : > { %v3041_v34 = vpop.xlane.xlu1 %1229 }
 0x284   : > { %v1300_v54 = vsub.f32 %v2915_v29, %v3041_v34  ;;  %v1179_v59 = vpop.f32.mrf.mxu3 }
 0x285   : > { %v3047_v45 = vadd.f32 %v2826_v10, %v1179_v59  ;;  %v1326_v59 = vmul.f32 1.442695, %v1291_v18 }
 0x286   : > { %v1344_v38 = vmul.f32 1.442695, %v1300_v54 }
 0x287   : > { %3405 = vst [vmem:[#allocation34_spill] sm:$0xff] %v3047_v45  ;;  %v1273_v61 = vsel %vm590_vm0, %v3047_v45, -inf }
 0x288   : > { %2297 = vpow2.f32 %v1344_v38  ;;  %1415 = vadd.xlane.f32.xlu1 %v1414_v50 }
 0x28b   : > { %v3049_v17 = vpop.xlane.xlu2 %1232 }
 0x28c   : > { %v1301_v30 = vsub.f32 %v2922_v47, %v3049_v17  ;;  %v1182_v31 = vpop.f32.mrf.mxu3 }
 0x28d   : > { %v3061_v50 = vadd.f32 %v2826_v10, %v1182_v31 }
 0x28e   : > { %v2298_v55 = vpop.eup %2297  ;;  %v1346_v44 = vmul.f32 1.442695, %v1301_v30 }
 0x28f   : > { %v1420_v54 = vsel %vm590_vm0, %v2298_v55, 0.0  ;;  %v1276_v31 = vsel %vm590_vm0, %v3061_v50, -inf }
 0x290   : > { %2299 = vpow2.f32 %v1346_v44  ;;  %1421 = vadd.xlane.f32.xlu2 %v1420_v54  ;;  %1274 = vmax.xlane.f32.xlu1 %v1273_v61 }
 0x291   : > { %2301 = vpow2.f32 %v1326_v59  ;;  %v1295_v59 = vsub.f32 %v2880_v8, %v3012_v51 }
 0x293   : > { %v3058_v38 = vpop.xlane.xlu1 %1235 }
 0x294   : > { %v1184_v43 = vpop.f32.mrf.mxu3  ;;  %v1302_v55 = vsub.f32 %v2927_v7, %v3058_v38 }
 0x295   : > { %v3064_v30 = vadd.f32 %v2826_v10, %v1184_v43 }
 0x296   : > { %v2300_v25 = vpop.eup %2299  ;;  %v1348_v18 = vmul.f32 1.442695, %v1302_v55 }
 0x297   : > { %v1279_v44 = vsel %vm590_vm0, %v3064_v30, -inf  ;;  %v1423_v54 = vsel %vm590_vm0, %v2300_v25, 0.0  ;;  %v2302_v7 = vpop.eup %2301  ;;  %v1299_v25 = vsub.f32 %v2908_v3, %v3034_v24 }
 0x298   : > { %1280 = vmax.xlane.f32.xlu2 %v1279_v44  ;;  %1424 = vadd.xlane.f32.xlu0 %v1423_v54  ;;  %2303 = vpow2.f32 %v1348_v18  ;;  %v1393_v54 = vsel %vm590_vm0, %v2302_v7, 0.0 }
 0x299   : > { %1277 = vmax.xlane.f32.xlu1 %v1276_v31  ;;  %v1334_v31 = vmul.f32 1.442695, %v1295_v59 }
 0x29b   : > { %v3073_v61 = vpop.xlane.xlu2 %1238 }
 0x29c   : > { %3406 = vst [vmem:[#allocation35_spill] sm:$0xff] %v3073_v61  ;;  %v1303_v43 = vsub.f32 %v2936_v11, %v3073_v61  ;;  %v1187_v19 = vpop.f32.mrf.mxu3  ;;  %v1342_v11 = vmul.f32 1.442695, %v1299_v25 }
 0x29d   : > { %v3080_v0 = vadd.f32 %v2826_v10, %v1187_v19 }
 0x29e   : > { %v1350_v44 = vmul.f32 1.442695, %v1303_v43  ;;  %v2304_v8 = vpop.eup %2303 }
 0x29f   : > { %v1282_v55 = vsel %vm590_vm0, %v3080_v0, -inf  ;;  %v1426_v59 = vsel %vm590_vm0, %v2304_v8, 0.0 }
 0x2a0   : > { %2305 = vpow2.f32 %v1350_v44  ;;  %1283 = vmax.xlane.f32.xlu0 %v1282_v55 }
 0x2a1   : > { %1394 = vadd.xlane.f32.xlu1 %v1393_v54  ;;  %2307 = vpow2.f32 %v1334_v31 }
 0x2a2   : > { %2309 = vpow2.f32 %v1342_v11 }
 0x2a3   : > { %v3087_v61 = vpop.xlane.xlu1 %1241  ;;  %v1386_v51 = vpop.xlane.xlu0 %1385 }
 0x2a4   : > { %3407 = vst [vmem:[#allocation36_spill] sm:$0xff] %v3087_v61  ;;  %v1189_v19 = vpop.f32.mrf.mxu3  ;;  %v1304_v43 = vsub.f32 %v2945_v58, %v3087_v61  ;;  %2311 = vlog2.f32 %v1386_v51 }
 0x2a5   : > { %v3090_v3 = vadd.f32 %v2826_v10, %v1189_v19 }
 0x2a6   : > { %v2306_v18 = vpop.eup %2305  ;;  %v1352_v44 = vmul.f32 1.442695, %v1304_v43 }
 0x2a7   : > { %v1285_v7 = vsel %vm590_vm0, %v3090_v3, -inf  ;;  %v1429_v25 = vsel %vm590_vm0, %v2306_v18, 0.0  ;;  %v2308_v55 = vpop.eup %2307 }
 0x2a8   : > { %1286 = vmax.xlane.f32.xlu2 %v1285_v7  ;;  %1427 = vadd.xlane.f32.xlu0 %v1426_v59  ;;  %v2310_v11 = vpop.eup %2309  ;;  %v1405_v51 = vsel %vm590_vm0, %v2308_v55, 0.0 }
 0x2a9   : > { %1430 = vadd.xlane.f32.xlu1 %v1429_v25  ;;  %v1417_v8 = vsel %vm590_vm0, %v2310_v11, 0.0 }
 0x2aa   : > { %v2312_v19 = vpop.eup %2311 }
 0x2ab   : > { %v3098_v10 = vpop.xlane.xlu2 %1244  ;;  %v1389_v54 = vpop.xlane.xlu1 %1388  ;;  %v1481_v18 = vmul.f32 0.6931472, %v2312_v19 }
 0x2ac   : > { %v1305_v31 = vsub.f32 %v2955_v27, %v3098_v10  ;;  %2313 = vlog2.f32 %v1389_v54 }
 0x2ad   : > { %2315 = vpow2.f32 %v1352_v44  ;;  %v1544_v44 = vadd.f32 %v1481_v18, %v2931_v26 }
 0x2ae   : > { %v1354_v58 = vmul.f32 1.442695, %v1305_v31 }
 0x2b0   : > { %2317 = vpow2.f32 %v1354_v58  ;;  %1418 = vadd.xlane.f32.xlu0 %v1417_v8  ;;  %1406 = vadd.xlane.f32.xlu2 %v1405_v51  ;;  %v1576_v51 = vsub.f32 %v2831_v20, %v1544_v44 }
 0x2b2   : > { %v2314_v43 = vpop.eup %2313 }
 0x2b3   : > { %v1483_v7 = vmul.f32 0.6931472, %v2314_v43  ;;  %v3104_v59 = vpop.xlane.xlu2 %1247  ;;  %v1392_v25 = vpop.xlane.xlu0 %1391 }
 0x2b4   : > { %v2316_v61 = vpop.eup %2315  ;;  %v1306_v54 = vsub.f32 %v2963_v40, %v3104_v59  ;;  %2319 = vlog2.f32 %v1392_v25 }
 0x2b5   : > { %v1545_v11 = vadd.f32 %v1483_v7, %v2940_v9  ;;  %v1432_v8 = vsel %vm590_vm0, %v2316_v61, 0.0 }
 0x2b6   : > { %v2318_v31 = vpop.eup %2317  ;;  %v1356_v55 = vmul.f32 1.442695, %v1306_v54 }
 0x2b7   : > { %v1577_v58 = vsub.f32 %v2838_v21, %v1545_v11  ;;  %v1435_v19 = vsel %vm590_vm0, %v2318_v31, 0.0  ;;  %v1608_v21 = vmul.f32 %v2534_v4, %v1576_v51 }
 0x2b8   : > { %2321 = vpow2.f32 %v1356_v55  ;;  %1436 = vadd.xlane.f32.xlu0 %v1435_v19  ;;  %1433 = vadd.xlane.f32.xlu2 %v1432_v8 }
 0x2b9   : > { %v1609_v25 = vmul.f32 %v2537_v5, %v1577_v58  ;;  %v1640_v5 = vsel %vm590_vm0, %v1608_v21, 0.0 }
 0x2ba   : > { %v2320_v43 = vpop.eup %2319 }
 0x2bb   : > { %v1485_v40 = vmul.f32 0.6931472, %v2320_v43  ;;  %v3115_v26 = vpop.xlane.xlu0 %1250  ;;  %v1641_v54 = vsel %vm590_vm0, %v1609_v25, 0.0 }
 0x2bc   : > { %v1307_v9 = vsub.f32 %v2971_v1, %v3115_v26  ;;  %v1642_v31 = vadd.f32 %v1641_v54, %v1640_v5 }
 0x2bd   : > { %v1546_v18 = vadd.f32 %v1485_v40, %v2950_v48 }
 0x2be   : > { %v2322_v7 = vpop.eup %2321  ;;  %v1358_v61 = vmul.f32 1.442695, %v1307_v9 }
 0x2bf   : > { %v1578_v11 = vsub.f32 %v2845_v63, %v1546_v18  ;;  %v1438_v20 = vsel %vm590_vm0, %v2322_v7, 0.0 }
 0x2c0   : > { %2323 = vpow2.f32 %v1358_v61  ;;  %1439 = vadd.xlane.f32.xlu1 %v1438_v20 }
 0x2c1   : > { %v1610_v44 = vmul.f32 %v2551_v13, %v1578_v11 }
 0x2c3   : > { %v1643_v55 = vsel %vm590_vm0, %v1610_v44, 0.0  ;;  %v3127_v4 = vpop.xlane.xlu2 %1253 }
 0x2c4   : > { %v1308_v48 = vsub.f32 %v2980_v33, %v3127_v4  ;;  %v3131_v40 = vadd.f32 %v1643_v55, %v1642_v31 }
 0x2c6   : > { %v2324_v58 = vpop.eup %2323  ;;  %v1360_v63 = vmul.f32 1.442695, %v1308_v48 }
 0x2c7   : > { %v1441_v19 = vsel %vm590_vm0, %v2324_v58, 0.0 }
 0x2c8   : > { %2325 = vpow2.f32 %v1360_v63  ;;  %1442 = vadd.xlane.f32.xlu2 %v1441_v19 }
 0x2cb   : > { %v1398_v8 = vpop.xlane.xlu2 %1397  ;;  %v3134_v51 = vpop.xlane.xlu0 %1256 }
 0x2cc   : > { %2327 = vlog2.f32 %v1398_v8  ;;  %v1309_v13 = vsub.f32 %v2991_v35, %v3134_v51 }
 0x2ce   : > { %v2326_v43 = vpop.eup %2325  ;;  %v1362_v25 = vmul.f32 1.442695, %v1309_v13 }
 0x2cf   : > { %v1444_v9 = vsel %vm590_vm0, %v2326_v43, 0.0 }
 0x2d0   : > { %2329 = vpow2.f32 %v1362_v25  ;;  %1445 = vadd.xlane.f32.xlu1 %v1444_v9 }
 0x2d2   : > { %v2328_v21 = vpop.eup %2327 }
 0x2d3   : > { %v1404_v18 = vpop.xlane.xlu1 %1403  ;;  %v1401_v7 = vpop.xlane.xlu0 %1400  ;;  %v1489_v61 = vmul.f32 0.6931472, %v2328_v21 }
 0x2d4   : > { %2331 = vlog2.f32 %v1404_v18 }
 0x2d5   : > { %2333 = vlog2.f32 %v1401_v7  ;;  %v1548_v20 = vadd.f32 %v1489_v61, %v2968_v57 }
 0x2d6   : > { %v2330_v54 = vpop.eup %2329 }
 0x2d7   : > { %v1447_v11 = vsel %vm590_vm0, %v2330_v54, 0.0  ;;  %v1580_v58 = vsub.f32 %v2861_v49, %v1548_v20 }
 0x2d8   : > { %1448 = vadd.xlane.f32.xlu2 %v1447_v11 }
 0x2d9   : > { %v1612_v21 = vmul.f32 %v2572_v22, %v1580_v58 }
 0x2da   : > { %v2332_v5 = vpop.eup %2331 }
 0x2db   : > { %v2334_v44 = vpop.eup %2333  ;;  %v1493_v31 = vmul.f32 0.6931472, %v2332_v5  ;;  %v3141_v55 = vpop.xlane.xlu2 %1262 }
 0x2dc   : > { %v3143_v48 = vpop.xlane.xlu0 %1259  ;;  %v1491_v63 = vmul.f32 0.6931472, %v2334_v44  ;;  %v1311_v19 = vsub.f32 %v3006_v52, %v3141_v55 }
 0x2dd   : > { %v1310_v8 = vsub.f32 %v2999_v36, %v3143_v48  ;;  %v1550_v13 = vadd.f32 %v1493_v31, %v2986_v46  ;;  %v1656_v46 = vsel %vm590_vm0, %v1612_v21, 0.0 }
 0x2de   : > { %v1549_v57 = vadd.f32 %v1491_v63, %v2977_v39  ;;  %v1366_v43 = vmul.f32 1.442695, %v1311_v19 }
 0x2df   : > { %v1364_v25 = vmul.f32 1.442695, %v1310_v8  ;;  %v1582_v9 = vsub.f32 %v2873_v42, %v1550_v13 }
 0x2e0   : > { %v1581_v18 = vsub.f32 %v2868_v16, %v1549_v57  ;;  %2335 = vpow2.f32 %v1366_v43 }
 0x2e1   : > { %2337 = vpow2.f32 %v1364_v25  ;;  %v1614_v49 = vmul.f32 %v2597_v32, %v1582_v9 }
 0x2e2   : > { %v1613_v7 = vmul.f32 %v2575_v23, %v1581_v18 }
 0x2e3   : > { %v1410_v61 = vpop.xlane.xlu1 %1409  ;;  %v1659_v16 = vsel %vm590_vm0, %v1614_v49, 0.0 }
 0x2e4   : > { %v3157_v54 = vpop.xlane.xlu0 %1265  ;;  %v1657_v39 = vsel %vm590_vm0, %v1613_v7, 0.0 }
 0x2e5   : > { %v1312_v42 = vsub.f32 %v3019_v37, %v3157_v54  ;;  %v1658_v11 = vadd.f32 %v1657_v39, %v1656_v46 }
 0x2e6   : > { %v2336_v22 = vpop.eup %2335 }
 0x2e7   : > { %v1368_v20 = vmul.f32 1.442695, %v1312_v42  ;;  %v2338_v5 = vpop.eup %2337  ;;  %v1453_v32 = vsel %vm590_vm0, %v2336_v22, 0.0  ;;  %v3165_v44 = vadd.f32 %v1659_v16, %v1658_v11 }
 0x2e8   : > { %1454 = vadd.xlane.f32.xlu1 %v1453_v32  ;;  %v1450_v23 = vsel %vm590_vm0, %v2338_v5, 0.0 }
 0x2e9   : > { %2339 = vpow2.f32 %v1368_v20  ;;  %1451 = vadd.xlane.f32.xlu2 %v1450_v23 }
 0x2eb   : > { %v3168_v31 = vpop.xlane.xlu1 %1268  ;;  %v1413_v21 = vpop.xlane.xlu2 %1412 }
 0x2ec   : > { %v1313_v58 = vsub.f32 %v3027_v60, %v3168_v31 }
 0x2ee   : > { %v1370_v19 = vmul.f32 1.442695, %v1313_v58 }
 0x2ef   : > { %v2340_v63 = vpop.eup %2339 }
 0x2f0   : > { %v1456_v8 = vsel %vm590_vm0, %v2340_v63, 0.0  ;;  %2341 = vpow2.f32 %v1370_v19 }
 0x2f1   : > { %1457 = vadd.xlane.f32.xlu2 %v1456_v8 }
 0x2f3   : > { %v3173_v13 = vpop.xlane.xlu1 %1271 }
 0x2f4   : > { %v1314_v57 = vsub.f32 %v3037_v56, %v3173_v13 }
 0x2f6   : > { %v2342_v43 = vpop.eup %2341  ;;  %v1372_v25 = vmul.f32 1.442695, %v1314_v57 }
 0x2f7   : > { %v1459_v9 = vsel %vm590_vm0, %v2342_v43, 0.0 }
 0x2f8   : > { %2343 = vpow2.f32 %v1372_v25  ;;  %1460 = vadd.xlane.f32.xlu0 %v1459_v9 }
 0x2fb   : > { %v1416_v18 = vpop.xlane.xlu1 %1415 }
 0x2fe   : > { %v2344_v49 = vpop.eup %2343 }
 0x2ff   : > { %v1462_v7 = vsel %vm590_vm0, %v2344_v49, 0.0 }
 0x300   : > { %1463 = vadd.xlane.f32.xlu0 %v1462_v7 }
 0x303   : > { %v1422_v46 = vpop.xlane.xlu2 %1421  ;;  %v3179_v39 = vpop.xlane.xlu1 %1274 }
 0x304   : > { %v1315_v32 = vsub.f32 %v3047_v45, %v3179_v39 }
 0x306   : > { %v1374_v58 = vmul.f32 1.442695, %v1315_v32 }
 0x30b   : > { %v3181_v42 = vpop.xlane.xlu2 %1280  ;;  %v1425_v11 = vpop.xlane.xlu0 %1424 }
 0x30c   : > { %v1317_v22 = vsub.f32 %v3064_v30, %v3181_v42  ;;  %v3185_v16 = vpop.xlane.xlu1 %1277  ;;  %2345 = vlog2.f32 %v1425_v11 }
 0x30d   : > { %v1316_v20 = vsub.f32 %v3061_v50, %v3185_v16  ;;  %2347 = vlog2.f32 %v1422_v46 }
 0x30e   : > { %v1378_v5 = vmul.f32 1.442695, %v1317_v22 }
 0x30f   : > { %v1376_v23 = vmul.f32 1.442695, %v1316_v20 }
 0x310   : > { %2349 = vpow2.f32 %v1378_v5 }
 0x311   : > { %2351 = vpow2.f32 %v1376_v23 }
 0x312   : > { %2353 = vlog2.f32 %v1410_v61  ;;  %v2346_v19 = vpop.eup %2345 }
 0x313   : > { %v3191_v63 = vpop.xlane.xlu0 %1283  ;;  %2355 = vlog2.f32 %v1413_v21  ;;  %v2348_v43 = vpop.eup %2347  ;;  %v1507_v7 = vmul.f32 0.6931472, %v2346_v19 }
 0x314   : > { %v1395_v8 = vpop.xlane.xlu1 %1394  ;;  %v1318_v57 = vsub.f32 %v3080_v0, %v3191_v63  ;;  %v1505_v21 = vmul.f32 0.6931472, %v2348_v43 }
 0x315   : > { %2357 = vlog2.f32 %v1395_v8  ;;  %v1557_v5 = vadd.f32 %v1507_v7, %v3049_v17 }
 0x316   : > { %v2350_v25 = vpop.eup %2349  ;;  %2359 = vlog2.f32 %v1416_v18  ;;  %v1380_v9 = vmul.f32 1.442695, %v1318_v57 }
 0x317   : > { %v2352_v49 = vpop.eup %2351  ;;  %2361 = vpow2.f32 %v1374_v58  ;;  %v1471_v46 = vsel %vm590_vm0, %v2350_v25, 0.0  ;;  %v1556_v25 = vadd.f32 %v1505_v21, %v3041_v34  ;;  %v1589_v7 = vsub.f32 %v2922_v47, %v1557_v5 }
 0x318   : > { %2363 = vpow2.f32 %v1380_v9  ;;  %1472 = vadd.xlane.f32.xlu1 %v1471_v46  ;;  %v1468_v61 = vsel %vm590_vm0, %v2352_v49, 0.0  ;;  %v2354_v11 = vpop.eup %2353 }
 0x319   : > { %1469 = vadd.xlane.f32.xlu0 %v1468_v61  ;;  %v2356_v22 = vpop.eup %2355  ;;  %v1497_v9 = vmul.f32 0.6931472, %v2354_v11  ;;  %v1588_v34 = vsub.f32 %v2915_v29, %v1556_v25  ;;  %v1621_v5 = vmul.f32 %v2687_v2, %v1589_v7  ;;  %v3408_v2 = vld [vmem:[#allocation26_spill] sm:$0xff] }
 0x31a   : > { %v1499_v49 = vmul.f32 0.6931472, %v2356_v22 }
 0x31b   : > { %v2358_v20 = vpop.eup %2357  ;;  %v3198_v32 = vpop.xlane.xlu2 %1286  ;;  %v1552_v11 = vadd.f32 %v1497_v9, %v3001_v62 }
 0x31c   : > { %v1428_v18 = vpop.xlane.xlu0 %1427  ;;  %v2360_v23 = vpop.eup %2359  ;;  %v1487_v8 = vmul.f32 0.6931472, %v2358_v20  ;;  %v1319_v58 = vsub.f32 %v3090_v3, %v3198_v32 }
 0x31d   : > { %v1431_v19 = vpop.xlane.xlu1 %1430  ;;  %2365 = vlog2.f32 %v1428_v18  ;;  %v2362_v57 = vpop.eup %2361  ;;  %v1501_v20 = vmul.f32 0.6931472, %v2360_v23 }
 0x31e   : > { %2367 = vlog2.f32 %v1431_v19  ;;  %v2364_v43 = vpop.eup %2363  ;;  %v1547_v46 = vadd.f32 %v1487_v8, %v2960_v41  ;;  %v1382_v17 = vmul.f32 1.442695, %v1319_v58  ;;  %v1465_v18 = vsel %vm590_vm0, %v2362_v57, 0.0 }
 0x31f   : > { %v1474_v61 = vsel %vm590_vm0, %v2364_v43, 0.0  ;;  %v1553_v41 = vadd.f32 %v1499_v49, %v3014_v15  ;;  %v1554_v58 = vadd.f32 %v1501_v20, %v3024_v12  ;;  %v1620_v57 = vmul.f32 %v2690_v6, %v1588_v34  ;;  %v3409_v43 = vld [vmem:[#allocation35_spill] sm:$0xff]  ;;  %v3410_v49 = vld [vmem:[#allocation29_spill] sm:$0xff] }
 0x320   : > { %v1579_v45 = vsub.f32 %v2854_v28, %v1547_v46  ;;  %2369 = vpow2.f32 %v1382_v17  ;;  %1475 = vadd.xlane.f32.xlu2 %v1474_v61  ;;  %v1689_v12 = vsel %vm590_vm0, %v1621_v5, 0.0  ;;  %v3411_v6 = vld [vmem:[#allocation27_spill] sm:$0xff] }
 0x321   : > { %1466 = vadd.xlane.f32.xlu0 %v1465_v18  ;;  %v1585_v25 = vsub.f32 %v3408_v2, %v1553_v41  ;;  %v1586_v61 = vsub.f32 %v3411_v6, %v1554_v58  ;;  %v3413_v18 = vld [vmem:[#allocation14_spill] sm:$0xff] }
 0x322   : > { %v1611_v22 = vmul.f32 %v2554_v14, %v1579_v45  ;;  %v1584_v45 = vsub.f32 %v2887_v53, %v1552_v11  ;;  %v3414_v11 = vld [vmem:[#allocation5_spill] sm:$0xff]  ;;  %v3417_v2 = vld [vmem:[#allocation10_spill] sm:$0xff] }
 0x323   : > { %v2366_v21 = vpop.eup %2365  ;;  %v1407_v8 = vpop.xlane.xlu2 %1406 }
 0x324   : > { %v2368_v47 = vpop.eup %2367  ;;  %v1509_v23 = vmul.f32 0.6931472, %v2366_v21  ;;  %v1419_v28 = vpop.xlane.xlu0 %1418  ;;  %2371 = vlog2.f32 %v1407_v8  ;;  %v1645_v29 = vsel %vm590_vm0, %v1611_v22, 0.0  ;;  %v1616_v41 = vmul.f32 %v3414_v11, %v1584_v45  ;;  %v3416_v8 = vld [vmem:[#allocation6_spill] sm:$0xff] }
 0x325   : > { %v1511_v19 = vmul.f32 0.6931472, %v2368_v47  ;;  %2373 = vlog2.f32 %v1419_v28  ;;  %v1646_v15 = vadd.f32 %v1645_v29, %v3131_v40  ;;  %v1688_v40 = vsel %vm590_vm0, %v1620_v57, 0.0  ;;  %v3415_v47 = vld [vmem:[#allocation13_spill] sm:$0xff] }
 0x326   : > { %v1558_v62 = vadd.f32 %v1509_v23, %v3058_v38  ;;  %v2370_v14 = vpop.eup %2369  ;;  %v3412_v38 = vld [vmem:[#allocation30_spill] sm:$0xff]  ;;  %v1690_v22 = vadd.f32 %v1689_v12, %v1688_v40  ;;  %v1617_v28 = vmul.f32 %v3416_v8, %v1585_v25  ;;  %v1618_v57 = vmul.f32 %v3417_v2, %v1586_v61 }
 0x327   : > { %v1559_v9 = vadd.f32 %v1511_v19, %v3409_v43  ;;  %v1477_v17 = vsel %vm590_vm0, %v2370_v14, 0.0  ;;  %v1647_v7 = vrot.slane %v1646_v15, 4 }
 0x328   : > { %v1590_v46 = vsub.f32 %v3410_v49, %v1558_v62  ;;  %1478 = vadd.xlane.f32.xlu1 %v1477_v17  ;;  %v1673_v17 = vsel %vm590_vm0, %v1617_v28, 0.0 }
 0x329   : > { %v1591_v20 = vsub.f32 %v3412_v38, %v1559_v9  ;;  %v1648_v34 = vadd.f32 %v1647_v7, %v1646_v15  ;;  %v3418_v9 = vld [vmem:[#allocation33_spill] sm:$0xff] }
 0x32a   : > { %v1622_v53 = vmul.f32 %v3413_v18, %v1590_v46  ;;  %v2372_v21 = vpop.eup %2371  ;;  %v3419_v7 = vld [vmem:[#allocation25_spill] sm:$0xff]  ;;  %v1672_v18 = vsel %vm590_vm0, %v1616_v41, 0.0 }
 0x32b   : > { %v1623_v5 = vmul.f32 %v3415_v47, %v1591_v20  ;;  %v2374_v23 = vpop.eup %2373  ;;  %v1495_v58 = vmul.f32 0.6931472, %v2372_v21  ;;  %v1434_v29 = vpop.xlane.xlu2 %1433  ;;  %v1649_v14 = vrot.slane %v1648_v34, 2  ;;  %v3420_v20 = vld [vmem:[#allocation28_spill] sm:$0xff]  ;;  %v3421_v21 = vld [vmem:[#allocation2_spill] sm:$0xff]  ;;  %v1674_v47 = vadd.f32 %v1673_v17, %v1672_v18 }
 0x32c   : > { %v1691_v19 = vsel %vm590_vm0, %v1622_v53, 0.0  ;;  %v1437_v62 = vpop.xlane.xlu0 %1436  ;;  %v1503_v43 = vmul.f32 0.6931472, %v2374_v23  ;;  %2375 = vlog2.f32 %v1434_v29  ;;  %v1675_v53 = vsel %vm590_vm0, %v1618_v57, 0.0 }
 0x32d   : > { %v1692_v15 = vadd.f32 %v1691_v19, %v1690_v22  ;;  %v1551_v49 = vadd.f32 %v1495_v58, %v3418_v9  ;;  %2377 = vlog2.f32 %v1437_v62  ;;  %v1650_v45 = vadd.f32 %v1649_v14, %v1648_v34 }
 0x32e   : > { %v1693_v12 = vsel %vm590_vm0, %v1623_v5, 0.0  ;;  %v1555_v46 = vadd.f32 %v1503_v43, %v3034_v24  ;;  %v3422_v5 = vld [vmem:[#allocation9_spill] sm:$0xff]  ;;  %v1676_v62 = vadd.f32 %v1675_v53, %v1674_v47  ;;  %v3424_v53 = vld [vmem:[#allocation31_spill] sm:$0xff] }
 0x32f   : > { %v1694_v25 = vadd.f32 %v1693_v12, %v1692_v15  ;;  %v1583_v6 = vsub.f32 %v3419_v7, %v1551_v49  ;;  %v1651_v38 = vrot.slane %v1650_v45, 1 }
 0x330   : > { %v1587_v40 = vsub.f32 %v3420_v20, %v1555_v46  ;;  %v3423_v46 = vld [vmem:[#allocation36_spill] sm:$0xff] }
 0x331   : > { %v1695_v61 = vrot.slane %v1694_v25, 4  ;;  %v1615_v11 = vmul.f32 %v3421_v21, %v1583_v6  ;;  %v1652_v34 = vadd.f32 %v1651_v38, %v1650_v45 }
 0x332   : > { %v2376_v22 = vpop.eup %2375  ;;  %v1619_v24 = vmul.f32 %v3422_v5, %v1587_v40 }
 0x333   : > { %v1696_v23 = vadd.f32 %v1695_v61, %v1694_v25  ;;  %v2378_v8 = vpop.eup %2377  ;;  %v1440_v28 = vpop.xlane.xlu1 %1439  ;;  %v1653_v19 = vsel %vm590_vm0, %v1652_v34, 0.0  ;;  %v1661_v58 = vsel %vm590_vm0, %v1615_v11, 0.0  ;;  %v1513_v14 = vmul.f32 0.6931472, %v2376_v22 }
 0x334   : > { %2379 = vlog2.f32 %v1440_v28  ;;  %1654 = vadd.xlane.f32.xlu2 %v1653_v19  ;;  %v1662_v41 = vadd.f32 %v1661_v58, %v3165_v44  ;;  %v1515_v2 = vmul.f32 0.6931472, %v2378_v8  ;;  %v1677_v57 = vsel %vm590_vm0, %v1619_v24, 0.0  ;;  %v3426_v8 = vld [vmem:[#allocation15_spill] sm:$0xff]  ;;  %v3427_v19 = vld [vmem:[#allocation16_spill] sm:$0xff] }
 0x335   : > { %v1697_v29 = vrot.slane %v1696_v23, 2  ;;  %v1678_v9 = vadd.f32 %v1677_v57, %v1676_v62  ;;  %v1560_v25 = vadd.f32 %v1513_v14, %v3423_v46  ;;  %v3428_v14 = vld [vmem:[#allocation18_spill] sm:$0xff]  ;;  %v3429_v46 = vld [vmem:[#allocation17_spill] sm:$0xff] }
 0x336   : > { %v1663_v15 = vrot.slane %v1662_v41, 4  ;;  %v1561_v17 = vadd.f32 %v1515_v2, %v3098_v10  ;;  %v3425_v10 = vld [vmem:[#allocation32_spill] sm:$0xff] }
 0x337   : > { %v1698_v43 = vadd.f32 %v1697_v29, %v1696_v23  ;;  %v1679_v12 = vrot.slane %v1678_v9, 4  ;;  %v1592_v21 = vsub.f32 %v3424_v53, %v1560_v25 }
 0x338   : > { %v1664_v45 = vadd.f32 %v1663_v15, %v1662_v41  ;;  %v1593_v11 = vsub.f32 %v2955_v27, %v1561_v17 }
 0x339   : > { %v1699_v49 = vrot.slane %v1698_v43, 1  ;;  %v1680_v20 = vadd.f32 %v1679_v12, %v1678_v9  ;;  %v1624_v28 = vmul.f32 %v3426_v8, %v1592_v21 }
 0x33a   : > { %v2380_v7 = vpop.eup %2379  ;;  %v1665_v38 = vrot.slane %v1664_v45, 2  ;;  %v1625_v58 = vmul.f32 %v3427_v19, %v1593_v11 }
 0x33b   : > { %v1700_v6 = vadd.f32 %v1699_v49, %v1698_v43  ;;  %v1517_v44 = vmul.f32 0.6931472, %v2380_v7  ;;  %v1443_v40 = vpop.xlane.xlu2 %1442  ;;  %v1681_v22 = vrot.slane %v1680_v20, 2  ;;  %v1704_v57 = vsel %vm590_vm0, %v1624_v28, 0.0 }
 0x33c   : > { %2381 = vlog2.f32 %v1443_v40  ;;  %v1666_v18 = vadd.f32 %v1665_v38, %v1664_v45  ;;  %v1705_v43 = vsel %vm590_vm0, %v1625_v58, 0.0 }
 0x33d   : > { %v1701_v61 = vsel %vm590_vm0, %v1700_v6, 0.0  ;;  %v1562_v34 = vadd.f32 %v1517_v44, %v3104_v59  ;;  %v1682_v24 = vadd.f32 %v1681_v22, %v1680_v20  ;;  %v1706_v12 = vadd.f32 %v1705_v43, %v1704_v57 }
 0x33e   : > { %1702 = vadd.xlane.f32.xlu2 %v1701_v61  ;;  %v1667_v47 = vrot.slane %v1666_v18, 1 }
 0x33f   : > { %v1594_v5 = vsub.f32 %v3425_v10, %v1562_v34  ;;  %v1683_v29 = vrot.slane %v1682_v24, 1 }
 0x340   : > { %v1668_v23 = vadd.f32 %v1667_v47, %v1666_v18 }
 0x341   : > { %v1626_v2 = vmul.f32 %v3428_v14, %v1594_v5  ;;  %v1684_v59 = vadd.f32 %v1683_v29, %v1682_v24  ;;  %v3430_v29 = vld [vmem:[#allocation20_spill] sm:$0xff] }
 0x342   : > { %v2382_v41 = vpop.eup %2381  ;;  %v1669_v62 = vsel %vm590_vm0, %v1668_v23, 0.0 }
 0x343   : > { %v1519_v27 = vmul.f32 0.6931472, %v2382_v41  ;;  %1670 = vadd.xlane.f32.xlu0 %v1669_v62  ;;  %v1685_v9 = vsel %vm590_vm0, %v1684_v59, 0.0  ;;  %v1707_v49 = vsel %vm590_vm0, %v1626_v2, 0.0  ;;  %v1446_v20 = vpop.xlane.xlu1 %1445  ;;  %v3431_v2 = vld [vmem:[#allocation19_spill] sm:$0xff] }
 0x344   : > { %1686 = vadd.xlane.f32.xlu1 %v1685_v9  ;;  %v1708_v17 = vadd.f32 %v1707_v49, %v1706_v12 }
 0x345   : > { %v1563_v15 = vadd.f32 %v1519_v27, %v3115_v26 }
 0x347   : > { %v1595_v45 = vsub.f32 %v2971_v1, %v1563_v15  ;;  %v3433_v15 = vld [vmem:[#allocation22_spill] sm:$0xff] }
 0x349   : > { %v1627_v25 = vmul.f32 %v3429_v46, %v1595_v45 }
 0x34b   : > { %v1709_v7 = vsel %vm590_vm0, %v1627_v25, 0.0  ;;  %v1449_v6 = vpop.xlane.xlu2 %1448 }
 0x34c   : > { %v1710_v38 = vadd.f32 %v1709_v7, %v1708_v17  ;;  %2383 = vlog2.f32 %v1449_v6 }
 0x34d   : > { %2385 = vlog2.f32 %v1446_v20 }
 0x34e   : > { %v1711_v44 = vrot.slane %v1710_v38, 4 }
 0x350   : > { %v1712_v40 = vadd.f32 %v1711_v44, %v1710_v38 }
 0x352   : > { %v1713_v26 = vrot.slane %v1712_v40, 2  ;;  %v2384_v18 = vpop.eup %2383 }
 0x353   : > { %v2386_v21 = vpop.eup %2385  ;;  %v1523_v11 = vmul.f32 0.6931472, %v2384_v18 }
 0x354   : > { %v1714_v61 = vadd.f32 %v1713_v26, %v1712_v40  ;;  %v1521_v34 = vmul.f32 0.6931472, %v2386_v21 }
 0x355   : > { %v1565_v10 = vadd.f32 %v1523_v11, %v3134_v51 }
 0x356   : > { %v1715_v53 = vrot.slane %v1714_v61, 1  ;;  %v1564_v24 = vadd.f32 %v1521_v34, %v3127_v4 }
 0x357   : > { %v1597_v23 = vsub.f32 %v2991_v35, %v1565_v10 }
 0x358   : > { %v1716_v1 = vadd.f32 %v1715_v53, %v1714_v61  ;;  %v1596_v28 = vsub.f32 %v2980_v33, %v1564_v24  ;;  %v3432_v33 = vld [vmem:[#allocation21_spill] sm:$0xff] }
 0x359   : > { %v1629_v41 = vmul.f32 %v3430_v29, %v1597_v23 }
 0x35a   : > { %v1717_v22 = vsel %vm590_vm0, %v1716_v1, 0.0  ;;  %v1628_v27 = vmul.f32 %v3431_v2, %v1596_v28 }
 0x35b   : > { %v1455_v47 = vpop.xlane.xlu1 %1454  ;;  %1718 = vadd.xlane.f32.xlu0 %v1717_v22  ;;  %v1721_v4 = vsel %vm590_vm0, %v1629_v41, 0.0 }
 0x35c   : > { %2387 = vlog2.f32 %v1455_v47  ;;  %v1452_v5 = vpop.xlane.xlu2 %1451  ;;  %v1720_v57 = vsel %vm590_vm0, %v1628_v27, 0.0 }
 0x35d   : > { %2389 = vlog2.f32 %v1452_v5  ;;  %v1722_v49 = vadd.f32 %v1721_v4, %v1720_v57  ;;  %v3436_v4 = vld [vmem:[#allocation3_spill] sm:$0xff] }
 0x362   : > { %v2388_v8 = vpop.eup %2387 }
 0x363   : > { %v2390_v19 = vpop.eup %2389  ;;  %v1527_v58 = vmul.f32 0.6931472, %v2388_v8 }
 0x364   : > { %v1525_v62 = vmul.f32 0.6931472, %v2390_v19  ;;  %v1458_v20 = vpop.xlane.xlu2 %1457 }
 0x365   : > { %v1567_v14 = vadd.f32 %v1527_v58, %v3141_v55 }
 0x366   : > { %v1566_v51 = vadd.f32 %v1525_v62, %v3143_v48 }
 0x367   : > { %v1599_v59 = vsub.f32 %v3006_v52, %v1567_v14  ;;  %v3434_v14 = vld [vmem:[#allocation23_spill] sm:$0xff] }
 0x368   : > { %v1598_v35 = vsub.f32 %v2999_v36, %v1566_v51  ;;  %v3435_v51 = vld [vmem:[#allocation24_spill] sm:$0xff] }
 0x369   : > { %v1631_v43 = vmul.f32 %v3432_v33, %v1599_v59 }
 0x36a   : > { %v1630_v9 = vmul.f32 %v3433_v15, %v1598_v35 }
 0x36b   : > { %v1725_v12 = vsel %vm590_vm0, %v1631_v43, 0.0  ;;  %v1461_v6 = vpop.xlane.xlu0 %1460 }
 0x36c   : > { %v1723_v45 = vsel %vm590_vm0, %v1630_v9, 0.0  ;;  %2391 = vlog2.f32 %v1461_v6  ;;  %v3437_v9 = vld [vmem:[#allocation34_spill] sm:$0xff] }
 0x36d   : > { %v1724_v55 = vadd.f32 %v1723_v45, %v1722_v49  ;;  %2393 = vlog2.f32 %v1458_v20 }
 0x36f   : > { %v1726_v46 = vadd.f32 %v1725_v12, %v1724_v55  ;;  %v3438_v55 = vld [vmem:[#allocation7_spill] sm:$0xff] }
 0x371   : > { %v1727_v48 = vrot.slane %v1726_v46, 4 }
 0x372   : > { %v2392_v40 = vpop.eup %2391 }
 0x373   : > { %v1728_v25 = vadd.f32 %v1727_v48, %v1726_v46  ;;  %v1464_v44 = vpop.xlane.xlu0 %1463  ;;  %v2394_v61 = vpop.eup %2393  ;;  %v1531_v21 = vmul.f32 0.6931472, %v2392_v40  ;;  %v3440_v48 = vld [vmem:[#allocation4_spill] sm:$0xff] }
 0x374   : > { %2395 = vlog2.f32 %v1464_v44  ;;  %v1529_v11 = vmul.f32 0.6931472, %v2394_v61  ;;  %v3442_v61 = vld [vmem:[#allocation12_spill] sm:$0xff] }
 0x375   : > { %v1729_v52 = vrot.slane %v1728_v25, 2  ;;  %v1569_v22 = vadd.f32 %v1531_v21, %v3168_v31 }
 0x376   : > { %v1568_v5 = vadd.f32 %v1529_v11, %v3157_v54 }
 0x377   : > { %v1730_v17 = vadd.f32 %v1729_v52, %v1728_v25  ;;  %v1601_v19 = vsub.f32 %v3027_v60, %v1569_v22  ;;  %v3441_v25 = vld [vmem:[#allocation11_spill] sm:$0xff] }
 0x378   : > { %v1600_v58 = vsub.f32 %v3019_v37, %v1568_v5 }
 0x379   : > { %v1731_v7 = vrot.slane %v1730_v17, 1  ;;  %v1633_v54 = vmul.f32 %v3434_v14, %v1601_v19 }
 0x37a   : > { %v2396_v53 = vpop.eup %2395  ;;  %v1632_v59 = vmul.f32 %v3435_v51, %v1600_v58  ;;  %v2433_v58 = vmov 0  }
 0x37b   : > { %v1732_v36 = vadd.f32 %v1731_v7, %v1730_v17  ;;  %v1533_v1 = vmul.f32 0.6931472, %v2396_v53  ;;  %2275 = vset.pattern.permute.xlu1 %v2433_v58  ;;  %2276 = vset.pattern.permute.xlu0 %v2433_v58 }
 0x37c   : > { %v1736_v43 = vsel %vm590_vm0, %v1632_v59, 0.0 }
 0x37d   : > { %v1733_v38 = vsel %vm590_vm0, %v1732_v36, 0.0  ;;  %v1570_v24 = vadd.f32 %v1533_v1, %v3173_v13 }
 0x37e   : > { %1734 = vadd.xlane.f32.xlu1 %v1733_v38 }
 0x37f   : > { %v1602_v29 = vsub.f32 %v3037_v56, %v1570_v24 }
 0x381   : > { %v1634_v35 = vmul.f32 %v3436_v4, %v1602_v29 }
 0x383   : > { %v1739_v15 = vsel %vm590_vm0, %v1634_v35, 0.0 }
 0x38b   : > { %v1473_v26 = vpop.xlane.xlu1 %1472 }
 0x38c   : > { %2397 = vlog2.f32 %v1473_v26  ;;  %v1470_v18 = vpop.xlane.xlu0 %1469 }
 0x38d   : > { %2399 = vlog2.f32 %v1470_v18 }
 0x392   : > { %v2398_v34 = vpop.eup %2397 }
 0x393   : > { %v2400_v47 = vpop.eup %2399  ;;  %v1476_v10 = vpop.xlane.xlu2 %1475  ;;  %v1539_v8 = vmul.f32 0.6931472, %v2398_v34 }
 0x394   : > { %2401 = vlog2.f32 %v1476_v10  ;;  %v1467_v23 = vpop.xlane.xlu0 %1466  ;;  %v1537_v28 = vmul.f32 0.6931472, %v2400_v47 }
 0x395   : > { %2403 = vlog2.f32 %v1467_v23  ;;  %v1573_v41 = vadd.f32 %v1539_v8, %v3181_v42  ;;  %v1737_v42 = vsel %vm590_vm0, %v1633_v54, 0.0 }
 0x396   : > { %v1572_v31 = vadd.f32 %v1537_v28, %v3185_v16  ;;  %v1738_v45 = vadd.f32 %v1737_v42, %v1736_v43 }
 0x397   : > { %v1605_v60 = vsub.f32 %v3064_v30, %v1573_v41  ;;  %v3439_v30 = vld [vmem:[#allocation8_spill] sm:$0xff] }
 0x398   : > { %v1604_v37 = vsub.f32 %v3061_v50, %v1572_v31 }
 0x399   : > { %v1637_v12 = vmul.f32 %v3438_v55, %v1605_v60 }
 0x39a   : > { %v2402_v62 = vpop.eup %2401  ;;  %v1636_v46 = vmul.f32 %v3439_v30, %v1604_v37 }
 0x39b   : > { %v2404_v2 = vpop.eup %2403  ;;  %v1541_v13 = vmul.f32 0.6931472, %v2402_v62  ;;  %v1479_v27 = vpop.xlane.xlu1 %1478  ;;  %v1753_v7 = vsel %vm590_vm0, %v1637_v12, 0.0 }
 0x39c   : > { %v1535_v57 = vmul.f32 0.6931472, %v2404_v2  ;;  %2405 = vlog2.f32 %v1479_v27  ;;  %v1752_v6 = vsel %vm590_vm0, %v1636_v46, 0.0 }
 0x39d   : > { %v1574_v56 = vadd.f32 %v1541_v13, %v3191_v63  ;;  %v1754_v26 = vadd.f32 %v1753_v7, %v1752_v6 }
 0x39e   : > { %v1571_v16 = vadd.f32 %v1535_v57, %v3179_v39  ;;  %v1740_v39 = vadd.f32 %v1739_v15, %v1738_v45 }
 0x39f   : > { %v1606_v33 = vsub.f32 %v3080_v0, %v1574_v56 }
 0x3a0   : > { %v1603_v49 = vsub.f32 %v3437_v9, %v1571_v16 }
 0x3a1   : > { %v1638_v52 = vmul.f32 %v3441_v25, %v1606_v33 }
 0x3a2   : > { %v2406_v50 = vpop.eup %2405  ;;  %v1635_v63 = vmul.f32 %v3440_v48, %v1603_v49 }
 0x3a3   : > { %v1543_v17 = vmul.f32 0.6931472, %v2406_v50  ;;  %v1755_v20 = vsel %vm590_vm0, %v1638_v52, 0.0 }
 0x3a4   : > { %v1741_v0 = vsel %vm590_vm0, %v1635_v63, 0.0  ;;  %v1756_v21 = vadd.f32 %v1755_v20, %v1754_v26 }
 0x3a5   : > { %v1575_v36 = vadd.f32 %v1543_v17, %v3198_v32  ;;  %v1742_v38 = vadd.f32 %v1741_v0, %v1740_v39 }
 0x3a7   : > { %v1607_v44 = vsub.f32 %v3090_v3, %v1575_v36  ;;  %v1743_v40 = vrot.slane %v1742_v38, 4  ;;  %v1655_v29 = vpop.xlane.xlu2 %1654 }
 0x3a9   : > { %v1639_v18 = vmul.f32 %v3442_v61, %v1607_v44  ;;  %v1744_v53 = vadd.f32 %v1743_v40, %v1742_v38 }
 0x3ab   : > { %v1745_v11 = vrot.slane %v1744_v53, 2  ;;  %v1757_v1 = vsel %vm590_vm0, %v1639_v18, 0.0 }
 0x3ac   : > { %v1758_v34 = vadd.f32 %v1757_v1, %v1756_v21 }
 0x3ad   : > { %v1746_v22 = vadd.f32 %v1745_v11, %v1744_v53 }
 0x3ae   : > { %v1759_v47 = vrot.slane %v1758_v34, 4 }
 0x3af   : > { %v1747_v10 = vrot.slane %v1746_v22, 1 }
 0x3b0   : > { %v1760_v5 = vadd.f32 %v1759_v47, %v1758_v34 }
 0x3b1   : > { %v1748_v32 = vadd.f32 %v1747_v10, %v1746_v22  ;;  %v1703_v62 = vpop.xlane.xlu2 %1702 }
 0x3b2   : > { %v1761_v24 = vrot.slane %v1760_v5, 2 }
 0x3b3   : > { %v1749_v23 = vsel %vm590_vm0, %v1748_v32, 0.0 }
 0x3b4   : > { %1750 = vadd.xlane.f32.xlu2 %v1749_v23  ;;  %v1762_v3 = vadd.f32 %v1761_v24, %v1760_v5 }
 0x3b6   : > { %v1763_v8 = vrot.slane %v1762_v3, 1  ;;  %v1671_v41 = vpop.xlane.xlu0 %1670 }
 0x3b7   : > { %v1687_v31 = vpop.xlane.xlu1 %1686  ;;  %v1769_v14 = vsel %vm1768_vm3, %v1655_v29, %v1671_v41 }
 0x3b8   : > { %v1764_v28 = vadd.f32 %v1763_v8, %v1762_v3  ;;  %v1771_v2 = vsel %vm1770_vm4, %v1769_v14, %v1687_v31 }
 0x3b9   : > { %v1773_v27 = vsel %vm1772_vm5, %v1771_v2, %v1703_v62 }
 0x3ba   : > { %v1765_v19 = vsel %vm590_vm0, %v1764_v28, 0.0  ;;  %vm1778_vm0 = vcmask 1045504  }
 0x3bb   : > { %1766 = vadd.xlane.f32.xlu0 %v1765_v19 }
 0x3ce   : > { %v1719_v54 = vpop.xlane.xlu0 %1718 }
 0x3cf   : > { %v1775_v59 = vsel %vm1774_vm6, %v1773_v27, %v1719_v54 }
 0x3f1   : > { %v1735_v13 = vpop.xlane.xlu1 %1734 }
 0x3f2   : > { %v1777_v4 = vsel %vm1776_vm7, %v1775_v59, %v1735_v13 }
 0x427   : > { %v1751_v51 = vpop.xlane.xlu2 %1750 }
 0x428   : > { %v1779_v35 = vsel %vm1778_vm0, %v1777_v4, %v1751_v51 }
 0x42e   : > { %v1767_v57 = vpop.xlane.xlu0 %1766 }
 0x42f   : > { %v1781_v60 = vsel %vm1780_vm8, %v1779_v35, %v1767_v57 }
 0x430   : > { %1785 = vperm.xlu1 %2275, %v1781_v60  }
 0x4a2   : > { %v1786_v37 = vpop.permute.xlu1 %1785 }
 0x4a3   : > { %1789 = vst [vmem:[%s255_s12] sm:$0xff] %v1786_v37 }
 0x4a4 PF: > { %s15_s20 = sadd.s32 1, %s2429_s20   ;;  %s3443_s18 = smov %s2425_s19 }
 0x4a5   : > { %p12_p6 = scmp.ge.s32.totalorder %s15_s20, 4   ;;  %s3444_s19 = smov %s3446_s21 }
 0x4a7   :  { %14 = sbr.rel (!%p12_p6) target bundleno = 2 (0x2), region = 74 }

</bundles_post_ra>
